<compile_context>
chip_gen: v7x
topology: tpu7x:2x2x1
jax: 0.10.0
libtpu: 0.0.40
codegen_flags: <defaults>
</compile_context>

<pallas_src>
import functools
import math

import jax
import jax.numpy as jnp
from jax.experimental import pallas as pl
from jax.experimental.pallas import tpu as pltpu

ITER = 3        # iter_  in soft_cldice.__init__
SMOOTH = 1.0    # smooth in soft_cldice.__init__

_POS = 1e30     # Python floats (NOT jnp arrays) -> no captured constants
_NEG = -1e30

_TARGET_BLOCK_F32_BYTES = 512 * 1024   # per-block f32 working-set target


def _use_tpu_roll() -> bool:
    """pltpu.roll only lowers through Mosaic; fall back to jnp.roll elsewhere.
    # TODO(synk): gate on the lowering target for AOT cross-compilation."""
    try:
        return jax.default_backend() == "tpu"
    except Exception:  # pragma: no cover
        return False


def _is_pow2(n: int) -> bool:
    return n > 0 and (n & (n - 1)) == 0


def _shift(x, delta, axis, use_roll):
    """out[i] = x[i + delta] (circular).  Wrapped/cross-plane values are fixed
    up by the caller's boundary masks, so the wrap never leaks."""
    n = x.shape[axis]
    s = (-delta) % n            # non-negative shift, np.roll convention
    if s == 0:
        return x
    if use_roll:
        return pltpu.roll(x, s, axis)     # XLU rotate: no extra VMEM copies
    return jnp.roll(x, s, axis=axis)      # interpret / non-TPU fallback


# ------------------------------ Pallas kernel ------------------------------
def _cldice_sums_kernel(*refs, h_plane, w_plane, w_valid, iters, use_roll):
    """One grid step = one group of (b, c) plane pairs.

    Inputs (1 or 2 refs, native dtype):
      * 1 ref : pre-packed (2*Hh, L) slab, rows [0,Hh)=y_true, [Hh,2Hh)=y_pred.
      * 2 refs: (Hh, L) y_true slab + (Hh, L) y_pred slab (concatenated here).
    Static params:
      h_plane : image height (row period of plane boundaries)
      w_plane : lane period of plane boundaries (padded plane width)
      w_valid : real image width (<= w_plane when W was lane-padded)
    """
    out_ref = refs[-1]
    in_refs = refs[:-1]
    if len(in_refs) == 2:
        x = jnp.concatenate([in_refs[0][...], in_refs[1][...]], axis=0)
    else:
        x = in_refs[0][...]
    x = x.astype(jnp.float32)          # cast here: DMA stayed in input dtype
    R, L = x.shape
    half = R // 2                      # [0,half)=true planes, [half,R)=pred

    # ---- plane-boundary masks, built once per block (modulo-free on the
    # common paths: direct equality / bitwise-and for power-of-two periods) ----
    rows = jax.lax.broadcasted_iota(jnp.int32, (R, L), 0)
    cols = jax.lax.broadcasted_iota(jnp.int32, (R, L), 1)
    if h_plane == half:                # one plane per half along rows
        top = (rows == 0) | (rows == half)
        bot = (rows == h_plane - 1) | (rows == R - 1)
    else:
        rin = (rows & (h_plane - 1)) if _is_pow2(h_plane) else (rows % h_plane)
        top = rin == 0
        bot = rin == h_plane - 1
    if w_plane == L:                   # one plane spans the whole lane axis
        lef = cols == 0
        rig = cols == w_valid - 1
    else:
        cin = (cols & (w_plane - 1)) if _is_pow2(w_plane) else (cols % w_plane)
        lef = cin == 0
        rig = cin == w_valid - 1

    def neighbors_v(v, fill):
        up = jnp.where(top, fill, _shift(v, -1, 0, use_roll))
        dn = jnp.where(bot, fill, _shift(v, +1, 0, use_roll))
        return up, dn

    def neighbors_h(v, fill):
        lf = jnp.where(lef, fill, _shift(v, -1, 1, use_roll))
        rt = jnp.where(rig, fill, _shift(v, +1, 1, use_roll))
        return lf, rt

    def soft_erode(v):
        up, dn = neighbors_v(v, _POS)
        lf, rt = neighbors_h(v, _POS)
        p1 = jnp.minimum(jnp.minimum(up, v), dn)     # -maxpool(-v, (3,1))
        p2 = jnp.minimum(jnp.minimum(lf, v), rt)     # -maxpool(-v, (1,3))
        return jnp.minimum(p1, p2)

    def soft_dilate(v):
        lf, rt = neighbors_h(v, _NEG)
        m = jnp.maximum(jnp.maximum(lf, v), rt)
        up, dn = neighbors_v(m, _NEG)
        return jnp.maximum(jnp.maximum(up, m), dn)   # maxpool(v,(3,3)), separable

    def soft_open(v):
        return soft_dilate(soft_erode(v))

    # soft_skel on the stacked slab computes BOTH skeletons in one pass.
    # TODO(synk): v5e micro-opt (vreg-resident lane strips via unrolled
    # fori_loop for small H) and optional bf16 erode/dilate on v6e/v7x.
    img = x
    img1 = soft_open(img)
    skel = jax.nn.relu(img - img1)
    for _ in range(iters):
        img = soft_erode(img)
        img1 = soft_open(img)
        delta = jax.nn.relu(img - img1)
        skel = skel + jax.nn.relu(delta - skel * delta)

    # ---- fused reductions: one sublane roll swaps true/pred halves, a single
    # multiply gives both cross terms, two lane reductions give all sums. ----
    xsw = _shift(x, half, 0, use_roll)     # rows r <-> r+half (plane-aligned)
    cross = skel * xsw                     # [:half]=skel_true*y_pred, [half:]=skel_pred*y_true
    skel_rows = jnp.sum(skel, axis=1, keepdims=True)     # (R, 1)
    cross_rows = jnp.sum(cross, axis=1, keepdims=True)   # (R, 1)
    row1 = jax.lax.broadcasted_iota(jnp.int32, (R, 1), 0)
    in_true = row1 < half
    zero = jnp.zeros_like(skel_rows)
    s_tsens_den = jnp.sum(jnp.where(in_true, skel_rows, zero))
    s_tprec_den = jnp.sum(jnp.where(in_true, zero, skel_rows))
    s_tsens_num = jnp.sum(jnp.where(in_true, cross_rows, zero))
    s_tprec_num = jnp.sum(jnp.where(in_true, zero, cross_rows))

    # Emit as a lane-dense (8,128) tile: row r holds partial sum r (broadcast).
    r8 = jax.lax.broadcasted_iota(jnp.int32, (8, 128), 0)
    tile = jnp.where(r8 == 0, s_tprec_num,
           jnp.where(r8 == 1, s_tprec_den,
           jnp.where(r8 == 2, s_tsens_num,
           jnp.where(r8 == 3, s_tsens_den, 0.0))))
    out_ref[0, :, :] = tile


def _vmem_limit(block_elems: int, itemsize: int) -> int:
    # double-buffered input blocks + ~14 live f32 block temporaries + slack,
    # clamped to the v7x 64 MiB physical VMEM ceiling.
    est = 2 * block_elems * itemsize + 14 * block_elems * 4 + (1 << 20)
    return int(min(max(est, 16 << 20), 64 << 20))


# --------------------------------- wrapper ---------------------------------
def soft_cldice(y_true, y_pred, *, iters=ITER, smooth=SMOOTH):
    """Equivalent of soft_cldice(iter_=3, smooth=1.0)(y_true, y_pred), NCHW."""
    assert y_true.ndim == 4 and y_true.shape == y_pred.shape
    B, C, H, W = y_true.shape
    if C <= 1:
        # [:, 1:] is empty in the reference -> all sums are 0 -> cl_dice == 0
        return jnp.float32(0.0)

    # Drop the background channel up front; keep the NATIVE dtype (the kernel
    # casts to f32 after the HBM->VMEM DMA).
    P = B * (C - 1)
    yt = y_true[:, 1:].reshape(P, H, W)
    yp = y_pred[:, 1:].reshape(P, H, W)
    itemsize = jnp.dtype(yt.dtype).itemsize
    use_roll = _use_tpu_roll()

    if W % 128 == 0 and H % 8 == 0:
        # ---- Path B: W already lane-friendly -> no HBM packing pre-pass ----
        plane_f32 = 2 * H * W * 4
        g = max(1, _TARGET_BLOCK_F32_BYTES // plane_f32)
        g = min(g, P)
        if P >= 2:                                    # v7x megacore: >= 2 groups
            g = min(g, pl.cdiv(P, 2))
        num_groups = pl.cdiv(P, g)
        P_pad = num_groups * g
        if P_pad != P:                                # zero planes are inert
            yt = jnp.pad(yt, ((0, P_pad - P), (0, 0), (0, 0)))
            yp = jnp.pad(yp, ((0, P_pad - P), (0, 0), (0, 0)))
        pt = yt.reshape(P_pad * H, W)                 # contiguous reshape: free
        pp = yp.reshape(P_pad * H, W)

        kernel = functools.partial(_cldice_sums_kernel, h_plane=H, w_plane=W,
                                   w_valid=W, iters=iters, use_roll=use_roll)
        block = (g * H, W)
        block_elems = 2 * g * H * W
        partials = pl.pallas_call(
            kernel,
            out_shape=jax.ShapeDtypeStruct((num_groups, 8, 128), jnp.float32),
            grid=(num_groups,),
            in_specs=[pl.BlockSpec(block, lambda i: (i, 0)),
                      pl.BlockSpec(block, lambda i: (i, 0))],
            out_specs=pl.BlockSpec((1, 8, 128), lambda i: (i, 0, 0)),
            compiler_params=pltpu.CompilerParams(
                dimension_semantics=("parallel",),
                vmem_limit_bytes=_vmem_limit(block_elems, itemsize)),
        )(pt, pp)
    else:
        # ---- Path A: lane-pack planes side by side (general / small W) ----
        w_lane, w_valid = W, W
        g_unit = 128 // math.gcd(W, 128)              # planes per 128-lane unit
        plane_f32 = 2 * H * w_lane * 4
        w128 = pl.cdiv(W, 128) * 128
        # VMEM blow-out guard: if the minimum lane-packed block is huge and
        # padding W to a lane multiple is cheaper, pad instead (g_unit -> 1).
        if plane_f32 * g_unit > 4 * _TARGET_BLOCK_F32_BYTES and 2 * w128 <= W * g_unit:
            yt = jnp.pad(yt, ((0, 0), (0, 0), (0, w128 - W)))
            yp = jnp.pad(yp, ((0, 0), (0, 0), (0, w128 - W)))
            w_lane, g_unit = w128, 1
            plane_f32 = 2 * H * w_lane * 4
        # TODO(synk): tile H on a second grid axis when a single padded plane
        # still exceeds the block budget (very large H*W with awkward W).

        n_unit = pl.cdiv(P, g_unit)
        chunks = max(1, _TARGET_BLOCK_F32_BYTES // (plane_f32 * g_unit))
        chunks = min(chunks, n_unit)
        if n_unit >= 2:                               # v7x megacore: >= 2 groups
            chunks = min(chunks, pl.cdiv(n_unit, 2))
        g = chunks * g_unit
        num_groups = pl.cdiv(P, g)
        P_pad = num_groups * g
        if P_pad != P:                                # zero planes are inert
            yt = jnp.pad(yt, ((0, P_pad - P), (0, 0), (0, 0)))
            yp = jnp.pad(yp, ((0, P_pad - P), (0, 0), (0, 0)))

        # (2, P_pad, H, w_lane) -> (2*H, P_pad*w_lane); XLA fuses stack +
        # transpose + reshape into one copy pass, still in the input dtype.
        packed = (jnp.stack([yt, yp], axis=0)
                  .transpose(0, 2, 1, 3)
                  .reshape(2 * H, P_pad * w_lane))

        kernel = functools.partial(_cldice_sums_kernel, h_plane=H,
                                   w_plane=w_lane, w_valid=w_valid,
                                   iters=iters, use_roll=use_roll)
        block = (2 * H, g * w_lane)
        block_elems = 2 * H * g * w_lane
        partials = pl.pallas_call(
            kernel,
            out_shape=jax.ShapeDtypeStruct((num_groups, 8, 128), jnp.float32),
            grid=(num_groups,),
            in_specs=[pl.BlockSpec(block, lambda i: (0, i))],
            out_specs=pl.BlockSpec((1, 8, 128), lambda i: (i, 0, 0)),
            compiler_params=pltpu.CompilerParams(
                dimension_semantics=("parallel",),
                vmem_limit_bytes=_vmem_limit(block_elems, itemsize)),
        )(packed)

    s = jnp.sum(partials[:, :4, 0], axis=0)           # combine per-group partials
    tprec = (s[0] + smooth) / (s[1] + smooth)
    tsens = (s[2] + smooth) / (s[3] + smooth)
    return 1.0 - 2.0 * (tprec * tsens) / (tprec + tsens)


# --------------------------- pure-JAX reference ---------------------------
def _minpool_h(x):
    pad = jnp.full_like(x[..., :1, :], _POS)
    up = jnp.concatenate([pad, x[..., :-1, :]], axis=-2)
    dn = jnp.concatenate([x[..., 1:, :], pad], axis=-2)
    return jnp.minimum(jnp.minimum(up, x), dn)


def _minpool_w(x):
    pad = jnp.full_like(x[..., :, :1], _POS)
    lf = jnp.concatenate([pad, x[..., :, :-1]], axis=-1)
    rt = jnp.concatenate([x[..., :, 1:], pad], axis=-1)
    return jnp.minimum(jnp.minimum(lf, x), rt)


def _maxpool_h(x):
    pad = jnp.full_like(x[..., :1, :], _NEG)
    up = jnp.concatenate([pad, x[..., :-1, :]], axis=-2)
    dn = jnp.concatenate([x[..., 1:, :], pad], axis=-2)
    return jnp.maximum(jnp.maximum(up, x), dn)


def _maxpool_w(x):
    pad = jnp.full_like(x[..., :, :1], _NEG)
    lf = jnp.concatenate([pad, x[..., :, :-1]], axis=-1)
    rt = jnp.concatenate([x[..., :, 1:], pad], axis=-1)
    return jnp.maximum(jnp.maximum(lf, x), rt)


def _soft_skel_ref(x, iters):
    def soft_erode(v):
        return jnp.minimum(_minpool_h(v), _minpool_w(v))

    def soft_open(v):
        return _maxpool_h(_maxpool_w(soft_erode(v)))

    img1 = soft_open(x)
    skel = jax.nn.relu(x - img1)
    img = x
    for _ in range(iters):
        img = soft_erode(img)
        img1 = soft_open(img)
        delta = jax.nn.relu(img - img1)
        skel = skel + jax.nn.relu(delta - skel * delta)
    return skel


def soft_cldice_ref(y_true, y_pred, iters=ITER, smooth=SMOOTH):
    skel_pred = _soft_skel_ref(y_pred, iters)
    skel_true = _soft_skel_ref(y_true, iters)
    tprec = (jnp.sum((skel_pred * y_true)[:, 1:]) + smooth) / (
        jnp.sum(skel_pred[:, 1:]) + smooth)
    tsens = (jnp.sum((skel_true * y_pred)[:, 1:]) + smooth) / (
        jnp.sum(skel_true[:, 1:]) + smooth)
    return 1.0 - 2.0 * (tprec * tsens) / (tprec + tsens)


if __name__ == "__main__":
    key = jax.random.PRNGKey(0)
    k1, k2, k3, k4 = jax.random.split(key, 4)

    # Case 1: small W -> lane-packed path (Path A), f32 inputs.
    y_true = jax.random.uniform(k1, (2, 4, 16, 16), dtype=jnp.float32)
    y_pred = jax.random.uniform(k2, (2, 4, 16, 16), dtype=jnp.float32)
    out = jax.block_until_ready(soft_cldice(y_true, y_pred))
    ref = jax.block_until_ready(soft_cldice_ref(y_true, y_pred))
    assert jnp.allclose(out, ref, atol=2e-5, rtol=2e-4), (out, ref)

    # Case 2: lane-friendly W -> no-packing path (Path B), >=2 grid steps.
    y_true2 = jax.random.uniform(k3, (2, 3, 8, 128), dtype=jnp.float32)
    y_pred2 = jax.random.uniform(k4, (2, 3, 8, 128), dtype=jnp.float32)
    out2 = jax.block_until_ready(soft_cldice(y_true2, y_pred2))
    ref2 = jax.block_until_ready(soft_cldice_ref(y_true2, y_pred2))
    assert jnp.allclose(out2, ref2, atol=2e-5, rtol=2e-4), (out2, ref2)

    # Case 3: bf16 inputs are DMA'd as bf16; the kernel casts to f32.
    yt_b = y_true.astype(jnp.bfloat16)
    yp_b = y_pred.astype(jnp.bfloat16)
    out3 = jax.block_until_ready(soft_cldice(yt_b, yp_b))
    ref3 = jax.block_until_ready(
        soft_cldice_ref(yt_b.astype(jnp.float32), yp_b.astype(jnp.float32)))
    assert jnp.allclose(out3, ref3, atol=2e-5, rtol=2e-4), (out3, ref3)

    print("KERNEL_OK")
</pallas_src>

<mosaic_0001>
module attributes {stable_mosaic.version = 11 : i64} {
  func.func @_cldice_sums_kernel(%arg0: i32, %arg1: memref<32x128xf32, #tpu.memory_space<vmem>>, %arg2: memref<1x8x128xf32, #tpu.memory_space<vmem>>) attributes {dimension_semantics = [#tpu.dimension_semantics<parallel>], iteration_bounds = array<i64: 1>, scalar_prefetch = 0 : i64, scratch_operands = 0 : i64, tpu.core_type = #tpu.core_type<tc>, window_params = [{transform_indices = @transform_0, window_bounds = array<i64: 32, 128>}, {transform_indices = @transform_1, window_bounds = array<i64: 1, 8, 128>}]} {
    %c0 = arith.constant 0 : index
    %c0_0 = arith.constant 0 : index
    %0 = vector.load %arg1[%c0, %c0_0] : memref<32x128xf32, #tpu.memory_space<vmem>>, vector<32x128xf32>
    %1 = tpu.iota {dimensions = array<i32: 0>} : vector<32x128xi32>
    %2 = tpu.iota {dimensions = array<i32: 1>} : vector<32x128xi32>
    %c0_i32 = arith.constant 0 : i32
    %3 = vector.broadcast %c0_i32 : i32 to vector<32x128xi32>
    %4 = arith.cmpi eq, %1, %3 : vector<32x128xi32>
    %c16_i32 = arith.constant 16 : i32
    %5 = vector.broadcast %c16_i32 : i32 to vector<32x128xi32>
    %6 = arith.cmpi eq, %1, %5 : vector<32x128xi32>
    %7 = arith.ori %4, %6 : vector<32x128xi1>
    %c15_i32 = arith.constant 15 : i32
    %8 = vector.broadcast %c15_i32 : i32 to vector<32x128xi32>
    %9 = arith.cmpi eq, %1, %8 : vector<32x128xi32>
    %c31_i32 = arith.constant 31 : i32
    %10 = vector.broadcast %c31_i32 : i32 to vector<32x128xi32>
    %11 = arith.cmpi eq, %1, %10 : vector<32x128xi32>
    %12 = arith.ori %9, %11 : vector<32x128xi1>
    %c15_i32_1 = arith.constant 15 : i32
    %13 = vector.broadcast %c15_i32_1 : i32 to vector<32x128xi32>
    %14 = arith.andi %2, %13 : vector<32x128xi32>
    %c0_i32_2 = arith.constant 0 : i32
    %15 = vector.broadcast %c0_i32_2 : i32 to vector<32x128xi32>
    %16 = arith.cmpi eq, %14, %15 : vector<32x128xi32>
    %c15_i32_3 = arith.constant 15 : i32
    %17 = vector.broadcast %c15_i32_3 : i32 to vector<32x128xi32>
    %18 = arith.cmpi eq, %14, %17 : vector<32x128xi32>
    %19 = vector.extract_strided_slice %0 {offsets = [31, 0], sizes = [1, 128], strides = [1, 1]} : vector<32x128xf32> to vector<1x128xf32>
    %20 = vector.extract_strided_slice %0 {offsets = [0, 0], sizes = [31, 128], strides = [1, 1]} : vector<32x128xf32> to vector<31x128xf32>
    %21 = tpu.concatenate %19, %20 in 0 : vector<1x128xf32>, vector<31x128xf32> -> vector<32x128xf32>
    %cst = arith.constant 1.000000e+30 : f32
    %22 = vector.broadcast %cst : f32 to vector<32x128xf32>
    %23 = arith.select %7, %22, %21 : vector<32x128xi1>, vector<32x128xf32>
    %24 = vector.extract_strided_slice %0 {offsets = [1, 0], sizes = [31, 128], strides = [1, 1]} : vector<32x128xf32> to vector<31x128xf32>
    %25 = vector.extract_strided_slice %0 {offsets = [0, 0], sizes = [1, 128], strides = [1, 1]} : vector<32x128xf32> to vector<1x128xf32>
    %26 = tpu.concatenate %24, %25 in 0 : vector<31x128xf32>, vector<1x128xf32> -> vector<32x128xf32>
    %cst_4 = arith.constant 1.000000e+30 : f32
    %27 = vector.broadcast %cst_4 : f32 to vector<32x128xf32>
    %28 = arith.select %12, %27, %26 : vector<32x128xi1>, vector<32x128xf32>
    %29 = vector.extract_strided_slice %0 {offsets = [0, 127], sizes = [32, 1], strides = [1, 1]} : vector<32x128xf32> to vector<32x1xf32>
    %30 = vector.extract_strided_slice %0 {offsets = [0, 0], sizes = [32, 127], strides = [1, 1]} : vector<32x128xf32> to vector<32x127xf32>
    %31 = tpu.concatenate %29, %30 in 1 : vector<32x1xf32>, vector<32x127xf32> -> vector<32x128xf32>
    %cst_5 = arith.constant 1.000000e+30 : f32
    %32 = vector.broadcast %cst_5 : f32 to vector<32x128xf32>
    %33 = arith.select %16, %32, %31 : vector<32x128xi1>, vector<32x128xf32>
    %34 = vector.extract_strided_slice %0 {offsets = [0, 1], sizes = [32, 127], strides = [1, 1]} : vector<32x128xf32> to vector<32x127xf32>
    %35 = vector.extract_strided_slice %0 {offsets = [0, 0], sizes = [32, 1], strides = [1, 1]} : vector<32x128xf32> to vector<32x1xf32>
    %36 = tpu.concatenate %34, %35 in 1 : vector<32x127xf32>, vector<32x1xf32> -> vector<32x128xf32>
    %cst_6 = arith.constant 1.000000e+30 : f32
    %37 = vector.broadcast %cst_6 : f32 to vector<32x128xf32>
    %38 = arith.select %18, %37, %36 : vector<32x128xi1>, vector<32x128xf32>
    %39 = arith.minimumf %23, %0 : vector<32x128xf32>
    %40 = arith.minimumf %39, %28 : vector<32x128xf32>
    %41 = arith.minimumf %33, %0 : vector<32x128xf32>
    %42 = arith.minimumf %41, %38 : vector<32x128xf32>
    %43 = arith.minimumf %40, %42 : vector<32x128xf32>
    %44 = vector.extract_strided_slice %43 {offsets = [0, 127], sizes = [32, 1], strides = [1, 1]} : vector<32x128xf32> to vector<32x1xf32>
    %45 = vector.extract_strided_slice %43 {offsets = [0, 0], sizes = [32, 127], strides = [1, 1]} : vector<32x128xf32> to vector<32x127xf32>
    %46 = tpu.concatenate %44, %45 in 1 : vector<32x1xf32>, vector<32x127xf32> -> vector<32x128xf32>
    %cst_7 = arith.constant -1.000000e+30 : f32
    %47 = vector.broadcast %cst_7 : f32 to vector<32x128xf32>
    %48 = arith.select %16, %47, %46 : vector<32x128xi1>, vector<32x128xf32>
    %49 = vector.extract_strided_slice %43 {offsets = [0, 1], sizes = [32, 127], strides = [1, 1]} : vector<32x128xf32> to vector<32x127xf32>
    %50 = vector.extract_strided_slice %43 {offsets = [0, 0], sizes = [32, 1], strides = [1, 1]} : vector<32x128xf32> to vector<32x1xf32>
    %51 = tpu.concatenate %49, %50 in 1 : vector<32x127xf32>, vector<32x1xf32> -> vector<32x128xf32>
    %cst_8 = arith.constant -1.000000e+30 : f32
    %52 = vector.broadcast %cst_8 : f32 to vector<32x128xf32>
    %53 = arith.select %18, %52, %51 : vector<32x128xi1>, vector<32x128xf32>
    %54 = arith.maximumf %48, %43 : vector<32x128xf32>
    %55 = arith.maximumf %54, %53 : vector<32x128xf32>
    %56 = vector.extract_strided_slice %55 {offsets = [31, 0], sizes = [1, 128], strides = [1, 1]} : vector<32x128xf32> to vector<1x128xf32>
    %57 = vector.extract_strided_slice %55 {offsets = [0, 0], sizes = [31, 128], strides = [1, 1]} : vector<32x128xf32> to vector<31x128xf32>
    %58 = tpu.concatenate %56, %57 in 0 : vector<1x128xf32>, vector<31x128xf32> -> vector<32x128xf32>
    %cst_9 = arith.constant -1.000000e+30 : f32
    %59 = vector.broadcast %cst_9 : f32 to vector<32x128xf32>
    %60 = arith.select %7, %59, %58 : vector<32x128xi1>, vector<32x128xf32>
    %61 = vector.extract_strided_slice %55 {offsets = [1, 0], sizes = [31, 128], strides = [1, 1]} : vector<32x128xf32> to vector<31x128xf32>
    %62 = vector.extract_strided_slice %55 {offsets = [0, 0], sizes = [1, 128], strides = [1, 1]} : vector<32x128xf32> to vector<1x128xf32>
    %63 = tpu.concatenate %61, %62 in 0 : vector<31x128xf32>, vector<1x128xf32> -> vector<32x128xf32>
    %cst_10 = arith.constant -1.000000e+30 : f32
    %64 = vector.broadcast %cst_10 : f32 to vector<32x128xf32>
    %65 = arith.select %12, %64, %63 : vector<32x128xi1>, vector<32x128xf32>
    %66 = arith.maximumf %60, %55 : vector<32x128xf32>
    %67 = arith.maximumf %66, %65 : vector<32x128xf32>
    %68 = arith.subf %0, %67 : vector<32x128xf32>
    %cst_11 = arith.constant 0.000000e+00 : f32
    %69 = vector.broadcast %cst_11 : f32 to vector<32x128xf32>
    %70 = arith.maximumf %68, %69 : vector<32x128xf32>
    %71 = vector.extract_strided_slice %0 {offsets = [31, 0], sizes = [1, 128], strides = [1, 1]} : vector<32x128xf32> to vector<1x128xf32>
    %72 = vector.extract_strided_slice %0 {offsets = [0, 0], sizes = [31, 128], strides = [1, 1]} : vector<32x128xf32> to vector<31x128xf32>
    %73 = tpu.concatenate %71, %72 in 0 : vector<1x128xf32>, vector<31x128xf32> -> vector<32x128xf32>
    %cst_12 = arith.constant 1.000000e+30 : f32
    %74 = vector.broadcast %cst_12 : f32 to vector<32x128xf32>
    %75 = arith.select %7, %74, %73 : vector<32x128xi1>, vector<32x128xf32>
    %76 = vector.extract_strided_slice %0 {offsets = [1, 0], sizes = [31, 128], strides = [1, 1]} : vector<32x128xf32> to vector<31x128xf32>
    %77 = vector.extract_strided_slice %0 {offsets = [0, 0], sizes = [1, 128], strides = [1, 1]} : vector<32x128xf32> to vector<1x128xf32>
    %78 = tpu.concatenate %76, %77 in 0 : vector<31x128xf32>, vector<1x128xf32> -> vector<32x128xf32>
    %cst_13 = arith.constant 1.000000e+30 : f32
    %79 = vector.broadcast %cst_13 : f32 to vector<32x128xf32>
    %80 = arith.select %12, %79, %78 : vector<32x128xi1>, vector<32x128xf32>
    %81 = vector.extract_strided_slice %0 {offsets = [0, 127], sizes = [32, 1], strides = [1, 1]} : vector<32x128xf32> to vector<32x1xf32>
    %82 = vector.extract_strided_slice %0 {offsets = [0, 0], sizes = [32, 127], strides = [1, 1]} : vector<32x128xf32> to vector<32x127xf32>
    %83 = tpu.concatenate %81, %82 in 1 : vector<32x1xf32>, vector<32x127xf32> -> vector<32x128xf32>
    %cst_14 = arith.constant 1.000000e+30 : f32
    %84 = vector.broadcast %cst_14 : f32 to vector<32x128xf32>
    %85 = arith.select %16, %84, %83 : vector<32x128xi1>, vector<32x128xf32>
    %86 = vector.extract_strided_slice %0 {offsets = [0, 1], sizes = [32, 127], strides = [1, 1]} : vector<32x128xf32> to vector<32x127xf32>
    %87 = vector.extract_strided_slice %0 {offsets = [0, 0], sizes = [32, 1], strides = [1, 1]} : vector<32x128xf32> to vector<32x1xf32>
    %88 = tpu.concatenate %86, %87 in 1 : vector<32x127xf32>, vector<32x1xf32> -> vector<32x128xf32>
    %cst_15 = arith.constant 1.000000e+30 : f32
    %89 = vector.broadcast %cst_15 : f32 to vector<32x128xf32>
    %90 = arith.select %18, %89, %88 : vector<32x128xi1>, vector<32x128xf32>
    %91 = arith.minimumf %75, %0 : vector<32x128xf32>
    %92 = arith.minimumf %91, %80 : vector<32x128xf32>
    %93 = arith.minimumf %85, %0 : vector<32x128xf32>
    %94 = arith.minimumf %93, %90 : vector<32x128xf32>
    %95 = arith.minimumf %92, %94 : vector<32x128xf32>
    %96 = vector.extract_strided_slice %95 {offsets = [31, 0], sizes = [1, 128], strides = [1, 1]} : vector<32x128xf32> to vector<1x128xf32>
    %97 = vector.extract_strided_slice %95 {offsets = [0, 0], sizes = [31, 128], strides = [1, 1]} : vector<32x128xf32> to vector<31x128xf32>
    %98 = tpu.concatenate %96, %97 in 0 : vector<1x128xf32>, vector<31x128xf32> -> vector<32x128xf32>
    %cst_16 = arith.constant 1.000000e+30 : f32
    %99 = vector.broadcast %cst_16 : f32 to vector<32x128xf32>
    %100 = arith.select %7, %99, %98 : vector<32x128xi1>, vector<32x128xf32>
    %101 = vector.extract_strided_slice %95 {offsets = [1, 0], sizes = [31, 128], strides = [1, 1]} : vector<32x128xf32> to vector<31x128xf32>
    %102 = vector.extract_strided_slice %95 {offsets = [0, 0], sizes = [1, 128], strides = [1, 1]} : vector<32x128xf32> to vector<1x128xf32>
    %103 = tpu.concatenate %101, %102 in 0 : vector<31x128xf32>, vector<1x128xf32> -> vector<32x128xf32>
    %cst_17 = arith.constant 1.000000e+30 : f32
    %104 = vector.broadcast %cst_17 : f32 to vector<32x128xf32>
    %105 = arith.select %12, %104, %103 : vector<32x128xi1>, vector<32x128xf32>
    %106 = vector.extract_strided_slice %95 {offsets = [0, 127], sizes = [32, 1], strides = [1, 1]} : vector<32x128xf32> to vector<32x1xf32>
    %107 = vector.extract_strided_slice %95 {offsets = [0, 0], sizes = [32, 127], strides = [1, 1]} : vector<32x128xf32> to vector<32x127xf32>
    %108 = tpu.concatenate %106, %107 in 1 : vector<32x1xf32>, vector<32x127xf32> -> vector<32x128xf32>
    %cst_18 = arith.constant 1.000000e+30 : f32
    %109 = vector.broadcast %cst_18 : f32 to vector<32x128xf32>
    %110 = arith.select %16, %109, %108 : vector<32x128xi1>, vector<32x128xf32>
    %111 = vector.extract_strided_slice %95 {offsets = [0, 1], sizes = [32, 127], strides = [1, 1]} : vector<32x128xf32> to vector<32x127xf32>
    %112 = vector.extract_strided_slice %95 {offsets = [0, 0], sizes = [32, 1], strides = [1, 1]} : vector<32x128xf32> to vector<32x1xf32>
    %113 = tpu.concatenate %111, %112 in 1 : vector<32x127xf32>, vector<32x1xf32> -> vector<32x128xf32>
    %cst_19 = arith.constant 1.000000e+30 : f32
    %114 = vector.broadcast %cst_19 : f32 to vector<32x128xf32>
    %115 = arith.select %18, %114, %113 : vector<32x128xi1>, vector<32x128xf32>
    %116 = arith.minimumf %100, %95 : vector<32x128xf32>
    %117 = arith.minimumf %116, %105 : vector<32x128xf32>
    %118 = arith.minimumf %110, %95 : vector<32x128xf32>
    %119 = arith.minimumf %118, %115 : vector<32x128xf32>
    %120 = arith.minimumf %117, %119 : vector<32x128xf32>
    %121 = vector.extract_strided_slice %120 {offsets = [0, 127], sizes = [32, 1], strides = [1, 1]} : vector<32x128xf32> to vector<32x1xf32>
    %122 = vector.extract_strided_slice %120 {offsets = [0, 0], sizes = [32, 127], strides = [1, 1]} : vector<32x128xf32> to vector<32x127xf32>
    %123 = tpu.concatenate %121, %122 in 1 : vector<32x1xf32>, vector<32x127xf32> -> vector<32x128xf32>
    %cst_20 = arith.constant -1.000000e+30 : f32
    %124 = vector.broadcast %cst_20 : f32 to vector<32x128xf32>
    %125 = arith.select %16, %124, %123 : vector<32x128xi1>, vector<32x128xf32>
    %126 = vector.extract_strided_slice %120 {offsets = [0, 1], sizes = [32, 127], strides = [1, 1]} : vector<32x128xf32> to vector<32x127xf32>
    %127 = vector.extract_strided_slice %120 {offsets = [0, 0], sizes = [32, 1], strides = [1, 1]} : vector<32x128xf32> to vector<32x1xf32>
    %128 = tpu.concatenate %126, %127 in 1 : vector<32x127xf32>, vector<32x1xf32> -> vector<32x128xf32>
    %cst_21 = arith.constant -1.000000e+30 : f32
    %129 = vector.broadcast %cst_21 : f32 to vector<32x128xf32>
    %130 = arith.select %18, %129, %128 : vector<32x128xi1>, vector<32x128xf32>
    %131 = arith.maximumf %125, %120 : vector<32x128xf32>
    %132 = arith.maximumf %131, %130 : vector<32x128xf32>
    %133 = vector.extract_strided_slice %132 {offsets = [31, 0], sizes = [1, 128], strides = [1, 1]} : vector<32x128xf32> to vector<1x128xf32>
    %134 = vector.extract_strided_slice %132 {offsets = [0, 0], sizes = [31, 128], strides = [1, 1]} : vector<32x128xf32> to vector<31x128xf32>
    %135 = tpu.concatenate %133, %134 in 0 : vector<1x128xf32>, vector<31x128xf32> -> vector<32x128xf32>
    %cst_22 = arith.constant -1.000000e+30 : f32
    %136 = vector.broadcast %cst_22 : f32 to vector<32x128xf32>
    %137 = arith.select %7, %136, %135 : vector<32x128xi1>, vector<32x128xf32>
    %138 = vector.extract_strided_slice %132 {offsets = [1, 0], sizes = [31, 128], strides = [1, 1]} : vector<32x128xf32> to vector<31x128xf32>
    %139 = vector.extract_strided_slice %132 {offsets = [0, 0], sizes = [1, 128], strides = [1, 1]} : vector<32x128xf32> to vector<1x128xf32>
    %140 = tpu.concatenate %138, %139 in 0 : vector<31x128xf32>, vector<1x128xf32> -> vector<32x128xf32>
    %cst_23 = arith.constant -1.000000e+30 : f32
    %141 = vector.broadcast %cst_23 : f32 to vector<32x128xf32>
    %142 = arith.select %12, %141, %140 : vector<32x128xi1>, vector<32x128xf32>
    %143 = arith.maximumf %137, %132 : vector<32x128xf32>
    %144 = arith.maximumf %143, %142 : vector<32x128xf32>
    %145 = arith.subf %95, %144 : vector<32x128xf32>
    %cst_24 = arith.constant 0.000000e+00 : f32
    %146 = vector.broadcast %cst_24 : f32 to vector<32x128xf32>
    %147 = arith.maximumf %145, %146 : vector<32x128xf32>
    %148 = arith.mulf %70, %147 : vector<32x128xf32>
    %149 = arith.subf %147, %148 : vector<32x128xf32>
    %cst_25 = arith.constant 0.000000e+00 : f32
    %150 = vector.broadcast %cst_25 : f32 to vector<32x128xf32>
    %151 = arith.maximumf %149, %150 : vector<32x128xf32>
    %152 = arith.addf %70, %151 : vector<32x128xf32>
    %153 = vector.extract_strided_slice %95 {offsets = [31, 0], sizes = [1, 128], strides = [1, 1]} : vector<32x128xf32> to vector<1x128xf32>
    %154 = vector.extract_strided_slice %95 {offsets = [0, 0], sizes = [31, 128], strides = [1, 1]} : vector<32x128xf32> to vector<31x128xf32>
    %155 = tpu.concatenate %153, %154 in 0 : vector<1x128xf32>, vector<31x128xf32> -> vector<32x128xf32>
    %cst_26 = arith.constant 1.000000e+30 : f32
    %156 = vector.broadcast %cst_26 : f32 to vector<32x128xf32>
    %157 = arith.select %7, %156, %155 : vector<32x128xi1>, vector<32x128xf32>
    %158 = vector.extract_strided_slice %95 {offsets = [1, 0], sizes = [31, 128], strides = [1, 1]} : vector<32x128xf32> to vector<31x128xf32>
    %159 = vector.extract_strided_slice %95 {offsets = [0, 0], sizes = [1, 128], strides = [1, 1]} : vector<32x128xf32> to vector<1x128xf32>
    %160 = tpu.concatenate %158, %159 in 0 : vector<31x128xf32>, vector<1x128xf32> -> vector<32x128xf32>
    %cst_27 = arith.constant 1.000000e+30 : f32
    %161 = vector.broadcast %cst_27 : f32 to vector<32x128xf32>
    %162 = arith.select %12, %161, %160 : vector<32x128xi1>, vector<32x128xf32>
    %163 = vector.extract_strided_slice %95 {offsets = [0, 127], sizes = [32, 1], strides = [1, 1]} : vector<32x128xf32> to vector<32x1xf32>
    %164 = vector.extract_strided_slice %95 {offsets = [0, 0], sizes = [32, 127], strides = [1, 1]} : vector<32x128xf32> to vector<32x127xf32>
    %165 = tpu.concatenate %163, %164 in 1 : vector<32x1xf32>, vector<32x127xf32> -> vector<32x128xf32>
    %cst_28 = arith.constant 1.000000e+30 : f32
    %166 = vector.broadcast %cst_28 : f32 to vector<32x128xf32>
    %167 = arith.select %16, %166, %165 : vector<32x128xi1>, vector<32x128xf32>
    %168 = vector.extract_strided_slice %95 {offsets = [0, 1], sizes = [32, 127], strides = [1, 1]} : vector<32x128xf32> to vector<32x127xf32>
    %169 = vector.extract_strided_slice %95 {offsets = [0, 0], sizes = [32, 1], strides = [1, 1]} : vector<32x128xf32> to vector<32x1xf32>
    %170 = tpu.concatenate %168, %169 in 1 : vector<32x127xf32>, vector<32x1xf32> -> vector<32x128xf32>
    %cst_29 = arith.constant 1.000000e+30 : f32
    %171 = vector.broadcast %cst_29 : f32 to vector<32x128xf32>
    %172 = arith.select %18, %171, %170 : vector<32x128xi1>, vector<32x128xf32>
    %173 = arith.minimumf %157, %95 : vector<32x128xf32>
    %174 = arith.minimumf %173, %162 : vector<32x128xf32>
    %175 = arith.minimumf %167, %95 : vector<32x128xf32>
    %176 = arith.minimumf %175, %172 : vector<32x128xf32>
    %177 = arith.minimumf %174, %176 : vector<32x128xf32>
    %178 = vector.extract_strided_slice %177 {offsets = [31, 0], sizes = [1, 128], strides = [1, 1]} : vector<32x128xf32> to vector<1x128xf32>
    %179 = vector.extract_strided_slice %177 {offsets = [0, 0], sizes = [31, 128], strides = [1, 1]} : vector<32x128xf32> to vector<31x128xf32>
    %180 = tpu.concatenate %178, %179 in 0 : vector<1x128xf32>, vector<31x128xf32> -> vector<32x128xf32>
    %cst_30 = arith.constant 1.000000e+30 : f32
    %181 = vector.broadcast %cst_30 : f32 to vector<32x128xf32>
    %182 = arith.select %7, %181, %180 : vector<32x128xi1>, vector<32x128xf32>
    %183 = vector.extract_strided_slice %177 {offsets = [1, 0], sizes = [31, 128], strides = [1, 1]} : vector<32x128xf32> to vector<31x128xf32>
    %184 = vector.extract_strided_slice %177 {offsets = [0, 0], sizes = [1, 128], strides = [1, 1]} : vector<32x128xf32> to vector<1x128xf32>
    %185 = tpu.concatenate %183, %184 in 0 : vector<31x128xf32>, vector<1x128xf32> -> vector<32x128xf32>
    %cst_31 = arith.constant 1.000000e+30 : f32
    %186 = vector.broadcast %cst_31 : f32 to vector<32x128xf32>
    %187 = arith.select %12, %186, %185 : vector<32x128xi1>, vector<32x128xf32>
    %188 = vector.extract_strided_slice %177 {offsets = [0, 127], sizes = [32, 1], strides = [1, 1]} : vector<32x128xf32> to vector<32x1xf32>
    %189 = vector.extract_strided_slice %177 {offsets = [0, 0], sizes = [32, 127], strides = [1, 1]} : vector<32x128xf32> to vector<32x127xf32>
    %190 = tpu.concatenate %188, %189 in 1 : vector<32x1xf32>, vector<32x127xf32> -> vector<32x128xf32>
    %cst_32 = arith.constant 1.000000e+30 : f32
    %191 = vector.broadcast %cst_32 : f32 to vector<32x128xf32>
    %192 = arith.select %16, %191, %190 : vector<32x128xi1>, vector<32x128xf32>
    %193 = vector.extract_strided_slice %177 {offsets = [0, 1], sizes = [32, 127], strides = [1, 1]} : vector<32x128xf32> to vector<32x127xf32>
    %194 = vector.extract_strided_slice %177 {offsets = [0, 0], sizes = [32, 1], strides = [1, 1]} : vector<32x128xf32> to vector<32x1xf32>
    %195 = tpu.concatenate %193, %194 in 1 : vector<32x127xf32>, vector<32x1xf32> -> vector<32x128xf32>
    %cst_33 = arith.constant 1.000000e+30 : f32
    %196 = vector.broadcast %cst_33 : f32 to vector<32x128xf32>
    %197 = arith.select %18, %196, %195 : vector<32x128xi1>, vector<32x128xf32>
    %198 = arith.minimumf %182, %177 : vector<32x128xf32>
    %199 = arith.minimumf %198, %187 : vector<32x128xf32>
    %200 = arith.minimumf %192, %177 : vector<32x128xf32>
    %201 = arith.minimumf %200, %197 : vector<32x128xf32>
    %202 = arith.minimumf %199, %201 : vector<32x128xf32>
    %203 = vector.extract_strided_slice %202 {offsets = [0, 127], sizes = [32, 1], strides = [1, 1]} : vector<32x128xf32> to vector<32x1xf32>
    %204 = vector.extract_strided_slice %202 {offsets = [0, 0], sizes = [32, 127], strides = [1, 1]} : vector<32x128xf32> to vector<32x127xf32>
    %205 = tpu.concatenate %203, %204 in 1 : vector<32x1xf32>, vector<32x127xf32> -> vector<32x128xf32>
    %cst_34 = arith.constant -1.000000e+30 : f32
    %206 = vector.broadcast %cst_34 : f32 to vector<32x128xf32>
    %207 = arith.select %16, %206, %205 : vector<32x128xi1>, vector<32x128xf32>
    %208 = vector.extract_strided_slice %202 {offsets = [0, 1], sizes = [32, 127], strides = [1, 1]} : vector<32x128xf32> to vector<32x127xf32>
    %209 = vector.extract_strided_slice %202 {offsets = [0, 0], sizes = [32, 1], strides = [1, 1]} : vector<32x128xf32> to vector<32x1xf32>
    %210 = tpu.concatenate %208, %209 in 1 : vector<32x127xf32>, vector<32x1xf32> -> vector<32x128xf32>
    %cst_35 = arith.constant -1.000000e+30 : f32
    %211 = vector.broadcast %cst_35 : f32 to vector<32x128xf32>
    %212 = arith.select %18, %211, %210 : vector<32x128xi1>, vector<32x128xf32>
    %213 = arith.maximumf %207, %202 : vector<32x128xf32>
    %214 = arith.maximumf %213, %212 : vector<32x128xf32>
    %215 = vector.extract_strided_slice %214 {offsets = [31, 0], sizes = [1, 128], strides = [1, 1]} : vector<32x128xf32> to vector<1x128xf32>
    %216 = vector.extract_strided_slice %214 {offsets = [0, 0], sizes = [31, 128], strides = [1, 1]} : vector<32x128xf32> to vector<31x128xf32>
    %217 = tpu.concatenate %215, %216 in 0 : vector<1x128xf32>, vector<31x128xf32> -> vector<32x128xf32>
    %cst_36 = arith.constant -1.000000e+30 : f32
    %218 = vector.broadcast %cst_36 : f32 to vector<32x128xf32>
    %219 = arith.select %7, %218, %217 : vector<32x128xi1>, vector<32x128xf32>
    %220 = vector.extract_strided_slice %214 {offsets = [1, 0], sizes = [31, 128], strides = [1, 1]} : vector<32x128xf32> to vector<31x128xf32>
    %221 = vector.extract_strided_slice %214 {offsets = [0, 0], sizes = [1, 128], strides = [1, 1]} : vector<32x128xf32> to vector<1x128xf32>
    %222 = tpu.concatenate %220, %221 in 0 : vector<31x128xf32>, vector<1x128xf32> -> vector<32x128xf32>
    %cst_37 = arith.constant -1.000000e+30 : f32
    %223 = vector.broadcast %cst_37 : f32 to vector<32x128xf32>
    %224 = arith.select %12, %223, %222 : vector<32x128xi1>, vector<32x128xf32>
    %225 = arith.maximumf %219, %214 : vector<32x128xf32>
    %226 = arith.maximumf %225, %224 : vector<32x128xf32>
    %227 = arith.subf %177, %226 : vector<32x128xf32>
    %cst_38 = arith.constant 0.000000e+00 : f32
    %228 = vector.broadcast %cst_38 : f32 to vector<32x128xf32>
    %229 = arith.maximumf %227, %228 : vector<32x128xf32>
    %230 = arith.mulf %152, %229 : vector<32x128xf32>
    %231 = arith.subf %229, %230 : vector<32x128xf32>
    %cst_39 = arith.constant 0.000000e+00 : f32
    %232 = vector.broadcast %cst_39 : f32 to vector<32x128xf32>
    %233 = arith.maximumf %231, %232 : vector<32x128xf32>
    %234 = arith.addf %152, %233 : vector<32x128xf32>
    %235 = vector.extract_strided_slice %177 {offsets = [31, 0], sizes = [1, 128], strides = [1, 1]} : vector<32x128xf32> to vector<1x128xf32>
    %236 = vector.extract_strided_slice %177 {offsets = [0, 0], sizes = [31, 128], strides = [1, 1]} : vector<32x128xf32> to vector<31x128xf32>
    %237 = tpu.concatenate %235, %236 in 0 : vector<1x128xf32>, vector<31x128xf32> -> vector<32x128xf32>
    %cst_40 = arith.constant 1.000000e+30 : f32
    %238 = vector.broadcast %cst_40 : f32 to vector<32x128xf32>
    %239 = arith.select %7, %238, %237 : vector<32x128xi1>, vector<32x128xf32>
    %240 = vector.extract_strided_slice %177 {offsets = [1, 0], sizes = [31, 128], strides = [1, 1]} : vector<32x128xf32> to vector<31x128xf32>
    %241 = vector.extract_strided_slice %177 {offsets = [0, 0], sizes = [1, 128], strides = [1, 1]} : vector<32x128xf32> to vector<1x128xf32>
    %242 = tpu.concatenate %240, %241 in 0 : vector<31x128xf32>, vector<1x128xf32> -> vector<32x128xf32>
    %cst_41 = arith.constant 1.000000e+30 : f32
    %243 = vector.broadcast %cst_41 : f32 to vector<32x128xf32>
    %244 = arith.select %12, %243, %242 : vector<32x128xi1>, vector<32x128xf32>
    %245 = vector.extract_strided_slice %177 {offsets = [0, 127], sizes = [32, 1], strides = [1, 1]} : vector<32x128xf32> to vector<32x1xf32>
    %246 = vector.extract_strided_slice %177 {offsets = [0, 0], sizes = [32, 127], strides = [1, 1]} : vector<32x128xf32> to vector<32x127xf32>
    %247 = tpu.concatenate %245, %246 in 1 : vector<32x1xf32>, vector<32x127xf32> -> vector<32x128xf32>
    %cst_42 = arith.constant 1.000000e+30 : f32
    %248 = vector.broadcast %cst_42 : f32 to vector<32x128xf32>
    %249 = arith.select %16, %248, %247 : vector<32x128xi1>, vector<32x128xf32>
    %250 = vector.extract_strided_slice %177 {offsets = [0, 1], sizes = [32, 127], strides = [1, 1]} : vector<32x128xf32> to vector<32x127xf32>
    %251 = vector.extract_strided_slice %177 {offsets = [0, 0], sizes = [32, 1], strides = [1, 1]} : vector<32x128xf32> to vector<32x1xf32>
    %252 = tpu.concatenate %250, %251 in 1 : vector<32x127xf32>, vector<32x1xf32> -> vector<32x128xf32>
    %cst_43 = arith.constant 1.000000e+30 : f32
    %253 = vector.broadcast %cst_43 : f32 to vector<32x128xf32>
    %254 = arith.select %18, %253, %252 : vector<32x128xi1>, vector<32x128xf32>
    %255 = arith.minimumf %239, %177 : vector<32x128xf32>
    %256 = arith.minimumf %255, %244 : vector<32x128xf32>
    %257 = arith.minimumf %249, %177 : vector<32x128xf32>
    %258 = arith.minimumf %257, %254 : vector<32x128xf32>
    %259 = arith.minimumf %256, %258 : vector<32x128xf32>
    %260 = vector.extract_strided_slice %259 {offsets = [31, 0], sizes = [1, 128], strides = [1, 1]} : vector<32x128xf32> to vector<1x128xf32>
    %261 = vector.extract_strided_slice %259 {offsets = [0, 0], sizes = [31, 128], strides = [1, 1]} : vector<32x128xf32> to vector<31x128xf32>
    %262 = tpu.concatenate %260, %261 in 0 : vector<1x128xf32>, vector<31x128xf32> -> vector<32x128xf32>
    %cst_44 = arith.constant 1.000000e+30 : f32
    %263 = vector.broadcast %cst_44 : f32 to vector<32x128xf32>
    %264 = arith.select %7, %263, %262 : vector<32x128xi1>, vector<32x128xf32>
    %265 = vector.extract_strided_slice %259 {offsets = [1, 0], sizes = [31, 128], strides = [1, 1]} : vector<32x128xf32> to vector<31x128xf32>
    %266 = vector.extract_strided_slice %259 {offsets = [0, 0], sizes = [1, 128], strides = [1, 1]} : vector<32x128xf32> to vector<1x128xf32>
    %267 = tpu.concatenate %265, %266 in 0 : vector<31x128xf32>, vector<1x128xf32> -> vector<32x128xf32>
    %cst_45 = arith.constant 1.000000e+30 : f32
    %268 = vector.broadcast %cst_45 : f32 to vector<32x128xf32>
    %269 = arith.select %12, %268, %267 : vector<32x128xi1>, vector<32x128xf32>
    %270 = vector.extract_strided_slice %259 {offsets = [0, 127], sizes = [32, 1], strides = [1, 1]} : vector<32x128xf32> to vector<32x1xf32>
    %271 = vector.extract_strided_slice %259 {offsets = [0, 0], sizes = [32, 127], strides = [1, 1]} : vector<32x128xf32> to vector<32x127xf32>
    %272 = tpu.concatenate %270, %271 in 1 : vector<32x1xf32>, vector<32x127xf32> -> vector<32x128xf32>
    %cst_46 = arith.constant 1.000000e+30 : f32
    %273 = vector.broadcast %cst_46 : f32 to vector<32x128xf32>
    %274 = arith.select %16, %273, %272 : vector<32x128xi1>, vector<32x128xf32>
    %275 = vector.extract_strided_slice %259 {offsets = [0, 1], sizes = [32, 127], strides = [1, 1]} : vector<32x128xf32> to vector<32x127xf32>
    %276 = vector.extract_strided_slice %259 {offsets = [0, 0], sizes = [32, 1], strides = [1, 1]} : vector<32x128xf32> to vector<32x1xf32>
    %277 = tpu.concatenate %275, %276 in 1 : vector<32x127xf32>, vector<32x1xf32> -> vector<32x128xf32>
    %cst_47 = arith.constant 1.000000e+30 : f32
    %278 = vector.broadcast %cst_47 : f32 to vector<32x128xf32>
    %279 = arith.select %18, %278, %277 : vector<32x128xi1>, vector<32x128xf32>
    %280 = arith.minimumf %264, %259 : vector<32x128xf32>
    %281 = arith.minimumf %280, %269 : vector<32x128xf32>
    %282 = arith.minimumf %274, %259 : vector<32x128xf32>
    %283 = arith.minimumf %282, %279 : vector<32x128xf32>
    %284 = arith.minimumf %281, %283 : vector<32x128xf32>
    %285 = vector.extract_strided_slice %284 {offsets = [0, 127], sizes = [32, 1], strides = [1, 1]} : vector<32x128xf32> to vector<32x1xf32>
    %286 = vector.extract_strided_slice %284 {offsets = [0, 0], sizes = [32, 127], strides = [1, 1]} : vector<32x128xf32> to vector<32x127xf32>
    %287 = tpu.concatenate %285, %286 in 1 : vector<32x1xf32>, vector<32x127xf32> -> vector<32x128xf32>
    %cst_48 = arith.constant -1.000000e+30 : f32
    %288 = vector.broadcast %cst_48 : f32 to vector<32x128xf32>
    %289 = arith.select %16, %288, %287 : vector<32x128xi1>, vector<32x128xf32>
    %290 = vector.extract_strided_slice %284 {offsets = [0, 1], sizes = [32, 127], strides = [1, 1]} : vector<32x128xf32> to vector<32x127xf32>
    %291 = vector.extract_strided_slice %284 {offsets = [0, 0], sizes = [32, 1], strides = [1, 1]} : vector<32x128xf32> to vector<32x1xf32>
    %292 = tpu.concatenate %290, %291 in 1 : vector<32x127xf32>, vector<32x1xf32> -> vector<32x128xf32>
    %cst_49 = arith.constant -1.000000e+30 : f32
    %293 = vector.broadcast %cst_49 : f32 to vector<32x128xf32>
    %294 = arith.select %18, %293, %292 : vector<32x128xi1>, vector<32x128xf32>
    %295 = arith.maximumf %289, %284 : vector<32x128xf32>
    %296 = arith.maximumf %295, %294 : vector<32x128xf32>
    %297 = vector.extract_strided_slice %296 {offsets = [31, 0], sizes = [1, 128], strides = [1, 1]} : vector<32x128xf32> to vector<1x128xf32>
    %298 = vector.extract_strided_slice %296 {offsets = [0, 0], sizes = [31, 128], strides = [1, 1]} : vector<32x128xf32> to vector<31x128xf32>
    %299 = tpu.concatenate %297, %298 in 0 : vector<1x128xf32>, vector<31x128xf32> -> vector<32x128xf32>
    %cst_50 = arith.constant -1.000000e+30 : f32
    %300 = vector.broadcast %cst_50 : f32 to vector<32x128xf32>
    %301 = arith.select %7, %300, %299 : vector<32x128xi1>, vector<32x128xf32>
    %302 = vector.extract_strided_slice %296 {offsets = [1, 0], sizes = [31, 128], strides = [1, 1]} : vector<32x128xf32> to vector<31x128xf32>
    %303 = vector.extract_strided_slice %296 {offsets = [0, 0], sizes = [1, 128], strides = [1, 1]} : vector<32x128xf32> to vector<1x128xf32>
    %304 = tpu.concatenate %302, %303 in 0 : vector<31x128xf32>, vector<1x128xf32> -> vector<32x128xf32>
    %cst_51 = arith.constant -1.000000e+30 : f32
    %305 = vector.broadcast %cst_51 : f32 to vector<32x128xf32>
    %306 = arith.select %12, %305, %304 : vector<32x128xi1>, vector<32x128xf32>
    %307 = arith.maximumf %301, %296 : vector<32x128xf32>
    %308 = arith.maximumf %307, %306 : vector<32x128xf32>
    %309 = arith.subf %259, %308 : vector<32x128xf32>
    %cst_52 = arith.constant 0.000000e+00 : f32
    %310 = vector.broadcast %cst_52 : f32 to vector<32x128xf32>
    %311 = arith.maximumf %309, %310 : vector<32x128xf32>
    %312 = arith.mulf %234, %311 : vector<32x128xf32>
    %313 = arith.subf %311, %312 : vector<32x128xf32>
    %cst_53 = arith.constant 0.000000e+00 : f32
    %314 = vector.broadcast %cst_53 : f32 to vector<32x128xf32>
    %315 = arith.maximumf %313, %314 : vector<32x128xf32>
    %316 = arith.addf %234, %315 : vector<32x128xf32>
    %317 = vector.extract_strided_slice %0 {offsets = [16, 0], sizes = [16, 128], strides = [1, 1]} : vector<32x128xf32> to vector<16x128xf32>
    %318 = vector.extract_strided_slice %0 {offsets = [0, 0], sizes = [16, 128], strides = [1, 1]} : vector<32x128xf32> to vector<16x128xf32>
    %319 = tpu.concatenate %317, %318 in 0 : vector<16x128xf32>, vector<16x128xf32> -> vector<32x128xf32>
    %320 = arith.mulf %316, %319 : vector<32x128xf32>
    %cst_54 = arith.constant dense<0.000000e+00> : vector<32xf32>
    %321 = vector.multi_reduction <add>, %316, %cst_54 [1] : vector<32x128xf32> to vector<32xf32>
    %322 = vector.shape_cast %321 : vector<32xf32> to vector<32x1xf32>
    %cst_55 = arith.constant dense<0.000000e+00> : vector<32xf32>
    %323 = vector.multi_reduction <add>, %320, %cst_55 [1] : vector<32x128xf32> to vector<32xf32>
    %324 = vector.shape_cast %323 : vector<32xf32> to vector<32x1xf32>
    %325 = tpu.iota {dimensions = array<i32: 0>} : vector<32x1xi32>
    %c16_i32_56 = arith.constant 16 : i32
    %326 = vector.broadcast %c16_i32_56 : i32 to vector<32x1xi32>
    %327 = arith.cmpi slt, %325, %326 : vector<32x1xi32>
    %cst_57 = arith.constant 0.000000e+00 : f32
    %328 = vector.broadcast %cst_57 : f32 to vector<32x1xf32>
    %329 = arith.select %327, %322, %328 : vector<32x1xi1>, vector<32x1xf32>
    %330 = vector.shape_cast %329 : vector<32x1xf32> to vector<1x32x1xf32>
    %cst_58 = arith.constant dense<0.000000e+00> : vector<1xf32>
    %331 = vector.multi_reduction <add>, %330, %cst_58 [1, 2] : vector<1x32x1xf32> to vector<1xf32>
    %332 = vector.shape_cast %331 : vector<1xf32> to vector<1x1x1xf32>
    %333 = vector.extract %332[0, 0, 0] : f32 from vector<1x1x1xf32>
    %334 = arith.select %327, %328, %322 : vector<32x1xi1>, vector<32x1xf32>
    %335 = vector.shape_cast %334 : vector<32x1xf32> to vector<1x32x1xf32>
    %cst_59 = arith.constant dense<0.000000e+00> : vector<1xf32>
    %336 = vector.multi_reduction <add>, %335, %cst_59 [1, 2] : vector<1x32x1xf32> to vector<1xf32>
    %337 = vector.shape_cast %336 : vector<1xf32> to vector<1x1x1xf32>
    %338 = vector.extract %337[0, 0, 0] : f32 from vector<1x1x1xf32>
    %339 = arith.select %327, %324, %328 : vector<32x1xi1>, vector<32x1xf32>
    %340 = vector.shape_cast %339 : vector<32x1xf32> to vector<1x32x1xf32>
    %cst_60 = arith.constant dense<0.000000e+00> : vector<1xf32>
    %341 = vector.multi_reduction <add>, %340, %cst_60 [1, 2] : vector<1x32x1xf32> to vector<1xf32>
    %342 = vector.shape_cast %341 : vector<1xf32> to vector<1x1x1xf32>
    %343 = vector.extract %342[0, 0, 0] : f32 from vector<1x1x1xf32>
    %344 = arith.select %327, %328, %324 : vector<32x1xi1>, vector<32x1xf32>
    %345 = vector.shape_cast %344 : vector<32x1xf32> to vector<1x32x1xf32>
    %cst_61 = arith.constant dense<0.000000e+00> : vector<1xf32>
    %346 = vector.multi_reduction <add>, %345, %cst_61 [1, 2] : vector<1x32x1xf32> to vector<1xf32>
    %347 = vector.shape_cast %346 : vector<1xf32> to vector<1x1x1xf32>
    %348 = vector.extract %347[0, 0, 0] : f32 from vector<1x1x1xf32>
    %349 = tpu.iota {dimensions = array<i32: 0>} : vector<8x128xi32>
    %c0_i32_62 = arith.constant 0 : i32
    %350 = vector.broadcast %c0_i32_62 : i32 to vector<8x128xi32>
    %351 = arith.cmpi eq, %349, %350 : vector<8x128xi32>
    %c1_i32 = arith.constant 1 : i32
    %352 = vector.broadcast %c1_i32 : i32 to vector<8x128xi32>
    %353 = arith.cmpi eq, %349, %352 : vector<8x128xi32>
    %c2_i32 = arith.constant 2 : i32
    %354 = vector.broadcast %c2_i32 : i32 to vector<8x128xi32>
    %355 = arith.cmpi eq, %349, %354 : vector<8x128xi32>
    %c3_i32 = arith.constant 3 : i32
    %356 = vector.broadcast %c3_i32 : i32 to vector<8x128xi32>
    %357 = arith.cmpi eq, %349, %356 : vector<8x128xi32>
    %cst_63 = arith.constant 0.000000e+00 : f32
    %358 = vector.broadcast %333 : f32 to vector<8x128xf32>
    %359 = vector.broadcast %cst_63 : f32 to vector<8x128xf32>
    %360 = arith.select %357, %358, %359 : vector<8x128xi1>, vector<8x128xf32>
    %361 = vector.broadcast %343 : f32 to vector<8x128xf32>
    %362 = arith.select %355, %361, %360 : vector<8x128xi1>, vector<8x128xf32>
    %363 = vector.broadcast %338 : f32 to vector<8x128xf32>
    %364 = arith.select %353, %363, %362 : vector<8x128xi1>, vector<8x128xf32>
    %365 = vector.broadcast %348 : f32 to vector<8x128xf32>
    %366 = arith.select %351, %365, %364 : vector<8x128xi1>, vector<8x128xf32>
    %c0_64 = arith.constant 0 : index
    %c0_65 = arith.constant 0 : index
    %c0_66 = arith.constant 0 : index
    %367 = vector.load %arg2[%c0_64, %c0_65, %c0_66] : memref<1x8x128xf32, #tpu.memory_space<vmem>>, vector<1x8x128xf32>
    %368 = vector.shape_cast %367 : vector<1x8x128xf32> to vector<8x128xf32>
    %369 = vector.shape_cast %366 : vector<8x128xf32> to vector<1x8x128xf32>
    tpu.vector_store %arg2[%c0_64, %c0_65, %c0_66], %369 {strides = array<i32>} : memref<1x8x128xf32, #tpu.memory_space<vmem>>, vector<1x8x128xf32>,
    return
  }
  func.func @transform_0(%arg0: i32) -> (i32, i32) {
    %c0_i32 = arith.constant 0 : i32
    %c0_i32_0 = arith.constant 0 : i32
    return %c0_i32, %arg0 : i32, i32
  }
  func.func @transform_1(%arg0: i32) -> (i32, i32, i32) {
    %c0_i32 = arith.constant 0 : i32
    %c0_i32_0 = arith.constant 0 : i32
    %c0_i32_1 = arith.constant 0 : i32
    return %arg0, %c0_i32, %c0_i32_0 : i32, i32, i32
  }
}

</mosaic_0001>

<bundles_post_ra>
// kernel: tpu_custom_call.1
= control target key start
LH: loop header
LB: loop body
LE: loop exit
PB: predicated region body
PF: predicated region fallthrough
CT: control target
= control target key end

     0   :  { %6 = vsyncpa [#allocation3], 0  ;;  %s1572_s0 = inlined_call_operand.hbm [shape: f32[32,128], index: 0, kind: input, shape index: {}]   ;;  %s1573_s1 = inlined_call_operand.hbm [shape: f32[1,8,128], index: 1, kind: output, shape index: {}]  }
   0x1   :  { %7 = vsyncpa [#allocation4], 0  ;;  %s977_s6 = smov [#allocation2]   ;;  %s929_s10 = scalar_lea.hbm %s1572_s0, 512 }
   0x2   :  { %s13_s7 = sshll.u32 %s977_s6, 4  ;;  %p930_p0 = scmp.ne.s32.totalorder %s1572_s0, %s929_s10  ;;  %s14_s7 = int_to_ptr.vmem [resolvable:$true] %s13_s7 }
   0x3   :  { %p933_p1 = scmp.lt.u32.totalorder %s929_s10, %s1572_s0 }
   0x5   :  { %p935_p2 = pnand %p933_p1, %p930_p0 }
   0x7   :  { %938 = shalt.err (!%p935_p2)
}
   0x8   :  { %s939_s15 = scalar_lea.vmem %s14_s7, 512  ;;  %p944_p4 = scmp.lt.s32.totalorder %s14_s7, %s14_s7 }
   0x9   :  { %p940_p3 = scmp.ne.s32.totalorder %s14_s7, %s939_s15  ;;  %p945_p5 = scmp.lt.s32.totalorder %s939_s15, %s939_s15 }
   0xb   :  { %p946_p6 = por %p945_p5, %p944_p4 }
   0xd   :  { %p947_p7 = pnand %p946_p6, %p940_p3 }
   0xf   :  { %950 = shalt.err (!%p947_p7)
}
  0x10   :  { %s978_s16 = smov 128   ;;  %s979_s17 = smov 8  }
  0x11   :  { %19 = dma.hbm_to_vmem [thread:$0]  %s1572_s0, 512, %s14_s7, [#allocation3], %s978_s16, %s978_s16, %s979_s17  }
  0x12   :  { %973 = dma.done.wait [#allocation3], 512  }
  0x13   :  { %974 = vsyncadd [#allocation3], 4294966784  ;;  %v1005_v0 = vld [vmem:[#allocation2 + $0x8] sm:$0xff]  ;;  %v1007_v1 = vld [vmem:[#allocation2] sm:$0xff]  ;;  %s980_s20 = smov 1   ;;  %s981_s0 = smov 127   ;;  %v27_v4 = vlaneseq }
  0x14   :  { %103 = vrot.lane.b32.xlu1 %v1005_v0, %s980_s20  ;;  %101 = vrot.lane.b32.xlu0 %v1007_v1, %s980_s20  ;;  %v1013_v2 = vld [vmem:[#allocation2 + $0x10] sm:$0xff]  ;;  %v1015_v3 = vld [vmem:[#allocation2 + $0x18] sm:$0xff]  ;;  %v68_v7 = vrot.slane %v1007_v1, 7  ;;  %vm67_vm0 = vcmask 1040384   ;;  %v84_v13 = vrot.slane %v1007_v1, 1  ;;  %v69_v14 = vrot.slane %v1005_v0, 7 }
  0x15   :  { %v1029_v5 = vshrl.u32 %v27_v4, 7  ;;  %v62_v6 = vrot.slane %v1015_v3, 7  ;;  %v33_v8 = vand.u32 127, %v27_v4  ;;  %v71_v10 = vrot.slane %v1013_v2, 7  ;;  %s982_s24 = smov [#allocation5]  }
  0x16   :  { %v89_v12 = vrot.slane %v1015_v3, 1  ;;  %vm83_vm1 = vcmask 1046528   ;;  %v85_v21 = vrot.slane %v1005_v0, 1  ;;  %v87_v24 = vrot.slane %v1013_v2, 1  ;;  %s902_s25 = sshll.u32 %s982_s24, 4  ;;  %s903_s25 = int_to_ptr.vmem [resolvable:$true] %s902_s25 }
  0x17   :  { %v1034_v9 = vadd.s32 24, %v1029_v5  ;;  %v1038_v11 = vadd.s32 16, %v1029_v5  ;;  %vm34_vm2 = vcmp.eq.s32.totalorder %v1029_v5, 0  ;;  %v78_v15 = vsel %vm67_vm0, %v62_v6, %v68_v7  ;;  %s951_s27 = scalar_lea.vmem %s903_s25, 128  ;;  %p956_p9 = scmp.lt.s32.totalorder %s903_s25, %s903_s25 }
  0x18   :  { %105 = vrot.lane.b32.xlu1 %v1013_v2, %s980_s20  ;;  %107 = vrot.lane.b32.xlu0 %v1015_v3, %s980_s20  ;;  %v58_v16 = vand.u32 15, %v33_v8  ;;  %v1046_v17 = vadd.s32 8, %v1029_v5  ;;  %v73_v20 = vsel %vm67_vm0, %v71_v10, %v62_v6  ;;  %v96_v22 = vsel %vm83_vm1, %v89_v12, %v84_v13  ;;  %p952_p8 = scmp.ne.s32.totalorder %s903_s25, %s951_s27  ;;  %p957_p10 = scmp.lt.s32.totalorder %s951_s27, %s951_s27 }
  0x19   :  { %vm53_vm3 = vcmp.eq.s32.totalorder %v1034_v9, 31  ;;  %vm40_vm4 = vcmp.eq.s32.totalorder %v1038_v11, 16  ;;  %v79_v23 = vsel %vm34_vm2, 1e+30, %v78_v15  ;;  %v72_v25 = vsel %vm67_vm0, %v69_v14, %v71_v10 }
  0x1a   :  { %vm1057_vm5 = vcmp.eq.s32.totalorder %v58_v16, 0  ;;  %v137_v27 = vmin.f32 %v73_v20, %v1015_v3  ;;  %vm47_vm6 = vcmp.eq.s32.totalorder %v1046_v17, 15  ;;  %v100_v30 = vsel %vm53_vm3, 1e+30, %v96_v22  ;;  %p958_p11 = por %p957_p10, %p956_p9 }
  0x1b   :  { %v134_v31 = vmin.f32 %v79_v23, %v1007_v1  ;;  %v81_v32 = vsel %vm40_vm4, 1e+30, %v72_v25  ;;  %v70_v33 = vsel %vm67_vm0, %v68_v7, %v69_v14  ;;  %v86_v36 = vsel %vm83_vm1, %v84_v13, %v85_v21 }
  0x1c   :  { %124 = vrot.lane.b32.xlu1 %v1015_v3, %s981_s0  ;;  %118 = vrot.lane.b32.xlu0 %v1007_v1, %s981_s0  ;;  %v88_v37 = vsel %vm83_vm1, %v85_v21, %v87_v24  ;;  %vm1076_vm7 = vcmp.eq.s32.totalorder %v58_v16, 15  ;;  %v141_v40 = vmin.f32 %v137_v27, %v100_v30  ;;  %v90_v41 = vsel %vm83_vm1, %v87_v24, %v89_v12  ;;  %p959_p12 = pnand %p958_p11, %p952_p8 }
  0x1d   :  { %v136_v42 = vmin.f32 %v81_v32, %v1013_v2  ;;  %v135_v43 = vmin.f32 %v70_v33, %v1005_v0  ;;  %v138_v48 = vmin.f32 %v134_v31, %v86_v36  ;;  %v98_v49 = vsel %vm47_vm6, 1e+30, %v88_v37 }
  0x1e   :  { %vm113_vm8 = vcmask 7168   ;;  %vm886_vm9 = vcmp.eq.s32.totalorder %v1029_v5, 3  ;;  %vm885_vm10 = vcmp.eq.s32.totalorder %v1029_v5, 2  ;;  %vm884_vm11 = vcmp.eq.s32.totalorder %v1029_v5, 1 }
  0x1f   :  { %v140_v55 = vmin.f32 %v136_v42, %v90_v41  ;;  %v139_v56 = vmin.f32 %v135_v43, %v98_v49 }
  0x20   :  { %122 = vrot.lane.b32.xlu1 %v1013_v2, %s981_s0  ;;  %120 = vrot.lane.b32.xlu0 %v1005_v0, %s981_s0 }
  0x86   :  { %v104_v18 = vpop.permute.xlu1 %103  ;;  %v102_v19 = vpop.permute.xlu0 %101 }
  0x87   :  { %v114_v34 = vsel %vm1057_vm5, 1e+30, %v102_v19  ;;  %v115_v44 = vsel %vm1057_vm5, 1e+30, %v104_v18 }
  0x88   :  { %v142_v45 = vmin.f32 %v114_v34, %v1007_v1  ;;  %v143_v57 = vmin.f32 %v115_v44, %v1005_v0 }
  0x8a   :  { %v106_v28 = vpop.permute.xlu1 %105  ;;  %v108_v29 = vpop.permute.xlu0 %107 }
  0x8b   :  { %v117_v35 = vsel %vm1057_vm5, 1e+30, %v108_v29  ;;  %v116_v50 = vsel %vm1057_vm5, 1e+30, %v106_v28 }
  0x8c   :  { %v145_v38 = vmin.f32 %v117_v35, %v1015_v3  ;;  %v144_v58 = vmin.f32 %v116_v50, %v1013_v2 }
  0x8e   :  { %v125_v46 = vpop.permute.xlu1 %124  ;;  %v119_v47 = vpop.permute.xlu0 %118 }
  0x8f   :  { %v133_v51 = vsel %vm1076_vm7, 1e+30, %v125_v46  ;;  %v130_v52 = vsel %vm1076_vm7, 1e+30, %v119_v47 }
  0x90   :  { %v149_v53 = vmin.f32 %v145_v38, %v133_v51  ;;  %v146_v54 = vmin.f32 %v142_v45, %v130_v52 }
  0x92   :  { %v1096_v59 = vmin.f32 %v141_v40, %v149_v53  ;;  %v1098_v60 = vmin.f32 %v138_v48, %v146_v54  ;;  %v123_v61 = vpop.permute.xlu1 %122  ;;  %v121_v62 = vpop.permute.xlu0 %120 }
  0x93   :  { %v132_v63 = vsel %vm1076_vm7, 1e+30, %v123_v61  ;;  %v131_v4 = vsel %vm1076_vm7, 1e+30, %v121_v62 }
  0x94   :  { %v148_v6 = vmin.f32 %v144_v58, %v132_v63  ;;  %v147_v7 = vmin.f32 %v143_v57, %v131_v4  ;;  %164 = vrot.lane.b32.xlu1 %v1096_v59, %s980_s20  ;;  %158 = vrot.lane.b32.xlu0 %v1098_v60, %s980_s20  ;;  %v252_v12 = vrot.slane %v1096_v59, 7  ;;  %v254_v13 = vrot.slane %v1098_v60, 7 }
  0x95   :  { %v269_v19 = vrot.slane %v1098_v60, 1  ;;  %v274_v20 = vrot.slane %v1096_v59, 1 }
  0x96   :  { %v1108_v8 = vmin.f32 %v140_v55, %v148_v6  ;;  %v1110_v10 = vmin.f32 %v139_v56, %v147_v7  ;;  %v264_v16 = vsel %vm67_vm0, %v252_v12, %v254_v13 }
  0x97   :  { %v265_v21 = vsel %vm34_vm2, 1e+30, %v264_v16  ;;  %v281_v30 = vsel %vm83_vm1, %v274_v20, %v269_v19 }
  0x98   :  { %162 = vrot.lane.b32.xlu1 %v1108_v8, %s980_s20  ;;  %160 = vrot.lane.b32.xlu0 %v1110_v10, %s980_s20  ;;  %v257_v14 = vrot.slane %v1108_v8, 7  ;;  %v255_v15 = vrot.slane %v1110_v10, 7  ;;  %v270_v22 = vrot.slane %v1110_v10, 1  ;;  %v272_v24 = vrot.slane %v1108_v8, 1 }
  0x99   :  { %v294_v29 = vmin.f32 %v265_v21, %v1098_v60  ;;  %v285_v43 = vsel %vm53_vm3, 1e+30, %v281_v30 }
  0x9a   :  { %v258_v18 = vsel %vm67_vm0, %v255_v15, %v257_v14  ;;  %v259_v23 = vsel %vm67_vm0, %v257_v14, %v252_v12  ;;  %v271_v32 = vsel %vm83_vm1, %v269_v19, %v270_v22  ;;  %v1145_v34 = vsel %vm67_vm0, %v254_v13, %v255_v15 }
  0x9b   :  { %v267_v28 = vsel %vm40_vm4, 1e+30, %v258_v18  ;;  %v297_v31 = vmin.f32 %v259_v23, %v1096_v59  ;;  %v273_v35 = vsel %vm83_vm1, %v270_v22, %v272_v24  ;;  %v298_v44 = vmin.f32 %v294_v29, %v271_v32 }
  0x9c   :  { %180 = vrot.lane.b32.xlu1 %v1096_v59, %s981_s0  ;;  %174 = vrot.lane.b32.xlu0 %v1098_v60, %s981_s0  ;;  %v296_v33 = vmin.f32 %v267_v28, %v1108_v8  ;;  %v275_v45 = vsel %vm83_vm1, %v272_v24, %v274_v20  ;;  %v283_v48 = vsel %vm47_vm6, 1e+30, %v273_v35  ;;  %v295_v49 = vmin.f32 %v1145_v34, %v1110_v10 }
  0x9d   :  { %v301_v47 = vmin.f32 %v297_v31, %v285_v43 }
  0x9e   :  { %v300_v53 = vmin.f32 %v296_v33, %v275_v45 }
  0xa0   :  { %178 = vrot.lane.b32.xlu1 %v1108_v8, %s981_s0  ;;  %176 = vrot.lane.b32.xlu0 %v1110_v10, %s981_s0 }
 0x106   :  { %v165_v25 = vpop.permute.xlu1 %164  ;;  %v159_v27 = vpop.permute.xlu0 %158 }
 0x107   :  { %v173_v36 = vsel %vm1057_vm5, -1e+30, %v165_v25  ;;  %v289_v37 = vsel %vm1057_vm5, 1e+30, %v165_v25  ;;  %v170_v38 = vsel %vm1057_vm5, -1e+30, %v159_v27 }
 0x108   :  { %v286_v42 = vsel %vm1057_vm5, 1e+30, %v159_v27  ;;  %v193_v50 = vmax.f32 %v173_v36, %v1096_v59  ;;  %v305_v51 = vmin.f32 %v289_v37, %v1096_v59  ;;  %v190_v52 = vmax.f32 %v170_v38, %v1098_v60 }
 0x109   :  { %v302_v54 = vmin.f32 %v286_v42, %v1098_v60 }
 0x10a   :  { %v163_v40 = vpop.permute.xlu1 %162  ;;  %v161_v41 = vpop.permute.xlu0 %160 }
 0x10b   :  { %v172_v46 = vsel %vm1057_vm5, -1e+30, %v163_v40  ;;  %v288_v55 = vsel %vm1057_vm5, 1e+30, %v163_v40  ;;  %v171_v56 = vsel %vm1057_vm5, -1e+30, %v161_v41 }
 0x10c   :  { %v287_v57 = vsel %vm1057_vm5, 1e+30, %v161_v41  ;;  %v192_v62 = vmax.f32 %v172_v46, %v1108_v8  ;;  %v304_v15 = vmin.f32 %v288_v55, %v1108_v8  ;;  %v191_v16 = vmax.f32 %v171_v56, %v1110_v10 }
 0x10d   :  { %v303_v18 = vmin.f32 %v287_v57, %v1110_v10  ;;  %v299_v46 = vmin.f32 %v295_v49, %v283_v48 }
 0x10e   :  { %v181_v58 = vpop.permute.xlu1 %180  ;;  %v175_v61 = vpop.permute.xlu0 %174 }
 0x10f   :  { %v189_v63 = vsel %vm1076_vm7, -1e+30, %v181_v58  ;;  %v293_v4 = vsel %vm1076_vm7, 1e+30, %v181_v58  ;;  %v186_v6 = vsel %vm1076_vm7, -1e+30, %v175_v61 }
 0x110   :  { %v197_v7 = vmax.f32 %v193_v50, %v189_v63  ;;  %v309_v12 = vmin.f32 %v305_v51, %v293_v4  ;;  %v194_v13 = vmax.f32 %v190_v52, %v186_v6  ;;  %v290_v14 = vsel %vm1076_vm7, 1e+30, %v175_v61 }
 0x111   :  { %v306_v19 = vmin.f32 %v302_v54, %v290_v14 }
 0x112   :  { %v199_v20 = vrot.slane %v197_v7, 7  ;;  %v224_v21 = vrot.slane %v197_v7, 1  ;;  %v1187_v22 = vmin.f32 %v301_v47, %v309_v12  ;;  %v204_v23 = vrot.slane %v194_v13, 7  ;;  %v179_v24 = vpop.permute.xlu1 %178  ;;  %v177_v25 = vpop.permute.xlu0 %176 }
 0x113   :  { %v219_v27 = vrot.slane %v194_v13, 1  ;;  %v1189_v28 = vmin.f32 %v298_v44, %v306_v19  ;;  %v188_v29 = vsel %vm1076_vm7, -1e+30, %v179_v24  ;;  %v292_v30 = vsel %vm1076_vm7, 1e+30, %v179_v24 }
 0x114   :  { %v214_v31 = vsel %vm67_vm0, %v199_v20, %v204_v23  ;;  %v196_v32 = vmax.f32 %v192_v62, %v188_v29  ;;  %v308_v33 = vmin.f32 %v304_v15, %v292_v30  ;;  %v187_v34 = vsel %vm1076_vm7, -1e+30, %v177_v25  ;;  %324 = vrot.lane.b32.xlu1 %v1187_v22, %s980_s20 }
 0x115   :  { %v215_v35 = vsel %vm34_vm2, -1e+30, %v214_v31  ;;  %v231_v36 = vsel %vm83_vm1, %v224_v21, %v219_v27  ;;  %v195_v37 = vmax.f32 %v191_v16, %v187_v34  ;;  %v291_v38 = vsel %vm1076_vm7, 1e+30, %v177_v25  ;;  %318 = vrot.lane.b32.xlu0 %v1189_v28, %s980_s20 }
 0x116   :  { %v236_v40 = vmax.f32 %v215_v35, %v194_v13  ;;  %v207_v41 = vrot.slane %v196_v32, 7  ;;  %v222_v42 = vrot.slane %v196_v32, 1  ;;  %v1207_v43 = vmin.f32 %v300_v53, %v308_v33 }
 0x117   :  { %v205_v44 = vrot.slane %v195_v37, 7  ;;  %v220_v45 = vrot.slane %v195_v37, 1  ;;  %v307_v47 = vmin.f32 %v303_v18, %v291_v38  ;;  %v235_v57 = vsel %vm53_vm3, -1e+30, %v231_v36 }
 0x118   :  { %v209_v50 = vsel %vm67_vm0, %v207_v41, %v199_v20  ;;  %322 = vrot.lane.b32.xlu1 %v1207_v43, %s980_s20  ;;  %v225_v63 = vsel %vm83_vm1, %v222_v42, %v224_v21  ;;  %v428_v12 = vrot.slane %v1187_v22, 7  ;;  %v433_v13 = vrot.slane %v1207_v43, 7 }
 0x119   :  { %v206_v51 = vsel %vm67_vm0, %v204_v23, %v205_v44  ;;  %v208_v52 = vsel %vm67_vm0, %v205_v44, %v207_v41  ;;  %v223_v54 = vsel %vm83_vm1, %v220_v45, %v222_v42  ;;  %v1215_v55 = vmin.f32 %v299_v46, %v307_v47 }
 0x11a   :  { %v233_v53 = vsel %vm47_vm6, -1e+30, %v223_v54  ;;  %v237_v56 = vmax.f32 %v206_v51, %v195_v37  ;;  %v239_v49 = vmax.f32 %v209_v50, %v197_v7  ;;  %v217_v58 = vsel %vm40_vm4, -1e+30, %v208_v52 }
 0x11b   :  { %320 = vrot.lane.b32.xlu0 %v1215_v55, %s980_s20  ;;  %v221_v62 = vsel %vm83_vm1, %v219_v27, %v220_v45  ;;  %v238_v6 = vmax.f32 %v217_v58, %v196_v32  ;;  %v430_v14 = vrot.slane %v1189_v28, 7  ;;  %v431_v15 = vrot.slane %v1215_v55, 7 }
 0x11c   :  { %v1221_v48 = vmax.f32 %v237_v56, %v233_v53  ;;  %340 = vrot.lane.b32.xlu1 %v1187_v22, %s981_s0  ;;  %v1233_v61 = vmax.f32 %v239_v49, %v235_v57  ;;  %v1237_v4 = vmax.f32 %v236_v40, %v221_v62  ;;  %v445_v16 = vrot.slane %v1189_v28, 1 }
 0x11d   :  { %v1241_v7 = vmax.f32 %v238_v6, %v225_v63  ;;  %v450_v18 = vrot.slane %v1187_v22, 1  ;;  %v435_v19 = vsel %vm67_vm0, %v433_v13, %v428_v12  ;;  %v440_v20 = vsel %vm67_vm0, %v428_v12, %v430_v14 }
 0x11e   :  { %v446_v23 = vrot.slane %v1215_v55, 1  ;;  %v448_v24 = vrot.slane %v1207_v43, 1  ;;  %v434_v27 = vsel %vm67_vm0, %v431_v15, %v433_v13  ;;  %v473_v30 = vmin.f32 %v435_v19, %v1187_v22 }
 0x11f   :  { %334 = vrot.lane.b32.xlu0 %v1189_v28, %s981_s0  ;;  %v457_v29 = vsel %vm83_vm1, %v450_v18, %v445_v16  ;;  %v441_v31 = vsel %vm34_vm2, 1e+30, %v440_v20  ;;  %v443_v33 = vsel %vm40_vm4, 1e+30, %v434_v27  ;;  %v432_v44 = vsel %vm67_vm0, %v430_v14, %v431_v15 }
 0x120   :  { %338 = vrot.lane.b32.xlu1 %v1207_v43, %s981_s0  ;;  %v449_v34 = vsel %vm83_vm1, %v446_v23, %v448_v24  ;;  %v461_v37 = vsel %vm53_vm3, 1e+30, %v457_v29  ;;  %v470_v38 = vmin.f32 %v441_v31, %v1189_v28  ;;  %v447_v41 = vsel %vm83_vm1, %v445_v16, %v446_v23 }
 0x121   :  { %v477_v40 = vmin.f32 %v473_v30, %v461_v37  ;;  %v451_v42 = vsel %vm83_vm1, %v448_v24, %v450_v18  ;;  %v472_v50 = vmin.f32 %v443_v33, %v1207_v43  ;;  %v459_v51 = vsel %vm47_vm6, 1e+30, %v449_v34 }
 0x122   :  { %v474_v62 = vmin.f32 %v470_v38, %v447_v41  ;;  %v471_v63 = vmin.f32 %v432_v44, %v1215_v55 }
 0x123   :  { %336 = vrot.lane.b32.xlu0 %v1215_v55, %s981_s0 }
 0x186   :  { %v325_v21 = vpop.permute.xlu1 %324 }
 0x187   :  { %v319_v25 = vpop.permute.xlu0 %318  ;;  %v333_v35 = vsel %vm1057_vm5, -1e+30, %v325_v21  ;;  %v465_v36 = vsel %vm1057_vm5, 1e+30, %v325_v21 }
 0x188   :  { %v330_v45 = vsel %vm1057_vm5, -1e+30, %v319_v25  ;;  %v462_v46 = vsel %vm1057_vm5, 1e+30, %v319_v25  ;;  %v353_v52 = vmax.f32 %v333_v35, %v1187_v22  ;;  %v481_v54 = vmin.f32 %v465_v36, %v1187_v22 }
 0x189   :  { %v350_v6 = vmax.f32 %v330_v45, %v1189_v28  ;;  %v478_v12 = vmin.f32 %v462_v46, %v1189_v28  ;;  %v476_v35 = vmin.f32 %v472_v50, %v451_v42 }
 0x18a   :  { %v323_v32 = vpop.permute.xlu1 %322 }
 0x18b   :  { %v332_v53 = vsel %vm1057_vm5, -1e+30, %v323_v32  ;;  %v464_v56 = vsel %vm1057_vm5, 1e+30, %v323_v32 }
 0x18c   :  { %v352_v15 = vmax.f32 %v332_v53, %v1207_v43  ;;  %v480_v16 = vmin.f32 %v464_v56, %v1207_v43 }
 0x18d   :  { %v321_v47 = vpop.permute.xlu0 %320 }
 0x18e   :  { %v341_v49 = vpop.permute.xlu1 %340  ;;  %v331_v18 = vsel %vm1057_vm5, -1e+30, %v321_v47  ;;  %v463_v19 = vsel %vm1057_vm5, 1e+30, %v321_v47 }
 0x18f   :  { %v349_v57 = vsel %vm1076_vm7, -1e+30, %v341_v49  ;;  %v469_v58 = vsel %vm1076_vm7, 1e+30, %v341_v49  ;;  %v351_v37 = vmax.f32 %v331_v18, %v1215_v55  ;;  %v479_v38 = vmin.f32 %v463_v19, %v1215_v55 }
 0x190   :  { %v357_v13 = vmax.f32 %v353_v52, %v349_v57  ;;  %v485_v14 = vmin.f32 %v481_v54, %v469_v58  ;;  %v475_v58 = vmin.f32 %v471_v63, %v459_v51 }
 0x191   :  { %v335_v20 = vpop.permute.xlu0 %334 }
 0x192   :  { %v359_v21 = vrot.slane %v357_v13, 7  ;;  %v384_v23 = vrot.slane %v357_v13, 1  ;;  %v1297_v24 = vmin.f32 %v477_v40, %v485_v14  ;;  %v346_v25 = vsel %vm1076_vm7, -1e+30, %v335_v20  ;;  %v339_v27 = vpop.permute.xlu1 %338 }
 0x193   :  { %v354_v29 = vmax.f32 %v350_v6, %v346_v25  ;;  %v466_v30 = vsel %vm1076_vm7, 1e+30, %v335_v20  ;;  %v348_v31 = vsel %vm1076_vm7, -1e+30, %v339_v27  ;;  %v468_v32 = vsel %vm1076_vm7, 1e+30, %v339_v27 }
 0x194   :  { %v482_v33 = vmin.f32 %v478_v12, %v466_v30  ;;  %v356_v34 = vmax.f32 %v352_v15, %v348_v31  ;;  %v484_v36 = vmin.f32 %v480_v16, %v468_v32  ;;  %500 = vrot.lane.b32.xlu1 %v1297_v24, %s980_s20  ;;  %v247_v30 = vsub.f32 %v1015_v3, %v1233_v61 }
 0x195   :  { %v364_v40 = vrot.slane %v354_v29, 7  ;;  %v379_v41 = vrot.slane %v354_v29, 1  ;;  %v337_v44 = vpop.permute.xlu0 %336 }
 0x196   :  { %v1311_v45 = vmin.f32 %v474_v62, %v482_v33  ;;  %v367_v46 = vrot.slane %v356_v34, 7  ;;  %v382_v47 = vrot.slane %v356_v34, 1  ;;  %v1313_v52 = vmin.f32 %v476_v35, %v484_v36 }
 0x197   :  { %v374_v54 = vsel %vm67_vm0, %v359_v21, %v364_v40  ;;  %v391_v42 = vsel %vm83_vm1, %v384_v23, %v379_v41  ;;  %v347_v50 = vsel %vm1076_vm7, -1e+30, %v337_v44  ;;  %v467_v53 = vsel %vm1076_vm7, 1e+30, %v337_v44 }
 0x198   :  { %v375_v56 = vsel %vm34_vm2, -1e+30, %v374_v54  ;;  %v369_v49 = vsel %vm67_vm0, %v367_v46, %v359_v21  ;;  %v385_v57 = vsel %vm83_vm1, %v382_v47, %v384_v23  ;;  %494 = vrot.lane.b32.xlu0 %v1311_v45, %s980_s20  ;;  %498 = vrot.lane.b32.xlu1 %v1313_v52, %s980_s20  ;;  %v355_v12 = vmax.f32 %v351_v37, %v347_v50 }
 0x199   :  { %v396_v62 = vmax.f32 %v375_v56, %v354_v29  ;;  %v399_v6 = vmax.f32 %v369_v49, %v357_v13  ;;  %v483_v14 = vmin.f32 %v479_v38, %v467_v53  ;;  %v395_v15 = vsel %vm53_vm3, -1e+30, %v391_v42 }
 0x19a   :  { %v365_v16 = vrot.slane %v355_v12, 7  ;;  %v380_v18 = vrot.slane %v355_v12, 1  ;;  %v245_v33 = vsub.f32 %v1005_v0, %v1221_v48  ;;  %v244_v36 = vsub.f32 %v1007_v1, %v1237_v4 }
 0x19b   :  { %v1331_v19 = vmin.f32 %v475_v58, %v483_v14  ;;  %v403_v20 = vmax.f32 %v399_v6, %v395_v15  ;;  %v246_v38 = vsub.f32 %v1013_v2, %v1241_v7  ;;  %v604_v6 = vrot.slane %v1297_v24, 7 }
 0x19c   :  { %516 = vrot.lane.b32.xlu1 %v1297_v24, %s981_s0  ;;  %v366_v51 = vsel %vm67_vm0, %v364_v40, %v365_v16  ;;  %v368_v63 = vsel %vm67_vm0, %v365_v16, %v367_v46  ;;  %v381_v21 = vsel %vm83_vm1, %v379_v41, %v380_v18  ;;  %v383_v13 = vsel %vm83_vm1, %v380_v18, %v382_v47 }
 0x19d   :  { %496 = vrot.lane.b32.xlu0 %v1331_v19, %s980_s20  ;;  %v377_v23 = vsel %vm40_vm4, -1e+30, %v368_v63  ;;  %v393_v25 = vsel %vm47_vm6, -1e+30, %v383_v13  ;;  %v397_v27 = vmax.f32 %v366_v51, %v355_v12  ;;  %v407_v32 = vsub.f32 %v1096_v59, %v403_v20 }
 0x19e   :  { %v398_v29 = vmax.f32 %v377_v23, %v356_v34  ;;  %v400_v35 = vmax.f32 %v396_v62, %v381_v21  ;;  %v251_v34 = vmax.f32 %v247_v30, 0.0  ;;  %v249_v41 = vmax.f32 %v245_v33, 0.0 }
 0x19f   :  { %v401_v31 = vmax.f32 %v397_v27, %v393_v25  ;;  %v411_v37 = vmax.f32 %v407_v32, 0.0  ;;  %v248_v48 = vmax.f32 %v244_v36, 0.0  ;;  %v606_v12 = vrot.slane %v1311_v45, 7 }
 0x1a0   :  { %514 = vrot.lane.b32.xlu1 %v1313_v52, %s981_s0  ;;  %v404_v61 = vsub.f32 %v1098_v60, %v400_v35  ;;  %v402_v59 = vmax.f32 %v398_v29, %v385_v57  ;;  %v609_v14 = vrot.slane %v1313_v52, 7  ;;  %v607_v15 = vrot.slane %v1331_v19, 7 }
 0x1a1   :  { %510 = vrot.lane.b32.xlu0 %v1311_v45, %s981_s0  ;;  %v405_v3 = vsub.f32 %v1110_v10, %v401_v31  ;;  %v415_v40 = vmul.f32 %v411_v37, %v251_v34  ;;  %v250_v10 = vmax.f32 %v246_v38, 0.0  ;;  %v621_v16 = vrot.slane %v1311_v45, 1 }
 0x1a2   :  { %v408_v44 = vmax.f32 %v404_v61, 0.0  ;;  %v406_v1 = vsub.f32 %v1108_v8, %v402_v59  ;;  %v626_v18 = vrot.slane %v1297_v24, 1  ;;  %v616_v51 = vsel %vm67_vm0, %v604_v6, %v606_v12 }
 0x1a3   :  { %v409_v0 = vmax.f32 %v405_v3, 0.0  ;;  %v419_v4 = vsub.f32 %v411_v37, %v415_v40  ;;  %v622_v63 = vrot.slane %v1331_v19, 1  ;;  %v624_v21 = vrot.slane %v1313_v52, 1 }
 0x1a4   :  { %v412_v47 = vmul.f32 %v408_v44, %v248_v48  ;;  %v410_v54 = vmax.f32 %v406_v1, 0.0  ;;  %v610_v13 = vsel %vm67_vm0, %v607_v15, %v609_v14  ;;  %v611_v23 = vsel %vm67_vm0, %v609_v14, %v604_v6 }
 0x1a5   :  { %512 = vrot.lane.b32.xlu0 %v1331_v19, %s981_s0  ;;  %v413_v46 = vmul.f32 %v409_v0, %v249_v41  ;;  %v423_v60 = vmax.f32 %v419_v4, 0.0  ;;  %v633_v25 = vsel %vm83_vm1, %v626_v18, %v621_v16  ;;  %v617_v27 = vsel %vm34_vm2, 1e+30, %v616_v51 }
 0x1a6   :  { %v416_v50 = vsub.f32 %v408_v44, %v412_v47  ;;  %v414_v2 = vmul.f32 %v410_v54, %v250_v10  ;;  %v619_v31 = vsel %vm40_vm4, 1e+30, %v610_v13  ;;  %v608_v32 = vsel %vm67_vm0, %v606_v12, %v607_v15 }
 0x1a7   :  { %v417_v42 = vsub.f32 %v409_v0, %v413_v46  ;;  %v1363_v7 = vadd.f32 %v423_v60, %v251_v34  ;;  %v625_v33 = vsel %vm83_vm1, %v622_v63, %v624_v21  ;;  %v637_v34 = vsel %vm53_vm3, 1e+30, %v633_v25 }
 0x1a8   :  { %v420_v56 = vmax.f32 %v416_v50, 0.0  ;;  %v418_v49 = vsub.f32 %v410_v54, %v414_v2  ;;  %v649_v37 = vmin.f32 %v611_v23, %v1297_v24  ;;  %v646_v3 = vmin.f32 %v617_v27, %v1311_v45 }
 0x1a9   :  { %v421_v53 = vmax.f32 %v417_v42, 0.0  ;;  %v623_v61 = vsel %vm83_vm1, %v621_v16, %v622_v63  ;;  %v648_v38 = vmin.f32 %v619_v31, %v1313_v52  ;;  %v635_v59 = vsel %vm47_vm6, 1e+30, %v625_v33 }
 0x1aa   :  { %v1367_v58 = vadd.f32 %v420_v56, %v248_v48  ;;  %v422_v62 = vmax.f32 %v418_v49, 0.0  ;;  %v647_v40 = vmin.f32 %v608_v32, %v1331_v19  ;;  %v627_v54 = vsel %vm83_vm1, %v624_v21, %v626_v18 }
 0x1ab   :  { %v1365_v57 = vadd.f32 %v421_v53, %v249_v41  ;;  %v653_v2 = vmin.f32 %v649_v37, %v637_v34  ;;  %v650_v56 = vmin.f32 %v646_v3, %v623_v61  ;;  %v652_v49 = vmin.f32 %v648_v38, %v627_v54 }
 0x1ac   :  { %v1369_v8 = vadd.f32 %v422_v62, %v250_v10  ;;  %v651_v62 = vmin.f32 %v647_v40, %v635_v59 }
 0x206   :  { %v501_v20 = vpop.permute.xlu1 %500 }
 0x207   :  { %v509_v35 = vsel %vm1057_vm5, -1e+30, %v501_v20  ;;  %v641_v36 = vsel %vm1057_vm5, 1e+30, %v501_v20 }
 0x208   :  { %v529_v41 = vmax.f32 %v509_v35, %v1297_v24  ;;  %v657_v0 = vmin.f32 %v641_v36, %v1297_v24 }
 0x20a   :  { %v495_v29 = vpop.permute.xlu0 %494  ;;  %v499_v30 = vpop.permute.xlu1 %498 }
 0x20b   :  { %v506_v48 = vsel %vm1057_vm5, -1e+30, %v495_v29  ;;  %v508_v44 = vsel %vm1057_vm5, -1e+30, %v499_v30  ;;  %v640_v4 = vsel %vm1057_vm5, 1e+30, %v499_v30 }
 0x20c   :  { %v638_v60 = vsel %vm1057_vm5, 1e+30, %v495_v29  ;;  %v526_v53 = vmax.f32 %v506_v48, %v1311_v45  ;;  %v528_v6 = vmax.f32 %v508_v44, %v1313_v52  ;;  %v656_v12 = vmin.f32 %v640_v4, %v1313_v52 }
 0x20d   :  { %v654_v18 = vmin.f32 %v638_v60, %v1311_v45 }
 0x20e   :  { %v517_v1 = vpop.permute.xlu1 %516 }
 0x20f   :  { %v497_v46 = vpop.permute.xlu0 %496  ;;  %v525_v47 = vsel %vm1076_vm7, -1e+30, %v517_v1  ;;  %v645_v10 = vsel %vm1076_vm7, 1e+30, %v517_v1 }
 0x210   :  { %v533_v42 = vmax.f32 %v529_v41, %v525_v47  ;;  %v661_v50 = vmin.f32 %v657_v0, %v645_v10  ;;  %v507_v14 = vsel %vm1057_vm5, -1e+30, %v497_v46  ;;  %v639_v20 = vsel %vm1057_vm5, 1e+30, %v497_v46 }
 0x211   :  { %v527_v33 = vmax.f32 %v507_v14, %v1331_v19  ;;  %v655_v37 = vmin.f32 %v639_v20, %v1331_v19 }
 0x212   :  { %v515_v15 = vpop.permute.xlu1 %514  ;;  %v1422_v16 = vmin.f32 %v653_v2, %v661_v50  ;;  %v535_v29 = vrot.slane %v533_v42, 7  ;;  %v560_v30 = vrot.slane %v533_v42, 1 }
 0x213   :  { %v511_v51 = vpop.permute.xlu0 %510  ;;  %v524_v63 = vsel %vm1076_vm7, -1e+30, %v515_v15  ;;  %v644_v21 = vsel %vm1076_vm7, 1e+30, %v515_v15 }
 0x214   :  { %v522_v13 = vsel %vm1076_vm7, -1e+30, %v511_v51  ;;  %v642_v23 = vsel %vm1076_vm7, 1e+30, %v511_v51  ;;  %v532_v25 = vmax.f32 %v528_v6, %v524_v63  ;;  %v660_v27 = vmin.f32 %v656_v12, %v644_v21  ;;  %676 = vrot.lane.b32.xlu1 %v1422_v16, %s980_s20 }
 0x215   :  { %v530_v31 = vmax.f32 %v526_v53, %v522_v13  ;;  %v658_v32 = vmin.f32 %v654_v18, %v642_v23 }
 0x216   :  { %v543_v35 = vrot.slane %v532_v25, 7  ;;  %v558_v36 = vrot.slane %v532_v25, 1  ;;  %v1438_v34 = vmin.f32 %v652_v49, %v660_v27 }
 0x217   :  { %v540_v3 = vrot.slane %v530_v31, 7  ;;  %v555_v61 = vrot.slane %v530_v31, 1  ;;  %v513_v38 = vpop.permute.xlu0 %512  ;;  %v1441_v59 = vmin.f32 %v650_v56, %v658_v32 }
 0x218   :  { %v545_v40 = vsel %vm67_vm0, %v543_v35, %v535_v29  ;;  %v523_v41 = vsel %vm1076_vm7, -1e+30, %v513_v38  ;;  %v643_v0 = vsel %vm1076_vm7, 1e+30, %v513_v38  ;;  %674 = vrot.lane.b32.xlu1 %v1438_v34, %s980_s20  ;;  %v561_v48 = vsel %vm83_vm1, %v558_v36, %v560_v30 }
 0x219   :  { %v550_v44 = vsel %vm67_vm0, %v535_v29, %v540_v3  ;;  %v567_v1 = vsel %vm83_vm1, %v560_v30, %v555_v61  ;;  %v531_v4 = vmax.f32 %v527_v33, %v523_v41  ;;  %v659_v46 = vmin.f32 %v655_v37, %v643_v0  ;;  %670 = vrot.lane.b32.xlu0 %v1441_v59, %s980_s20 }
 0x21a   :  { %v551_v47 = vsel %vm34_vm2, -1e+30, %v550_v44  ;;  %v571_v10 = vsel %vm53_vm3, -1e+30, %v567_v1  ;;  %v575_v54 = vmax.f32 %v545_v40, %v533_v42 }
 0x21b   :  { %v572_v60 = vmax.f32 %v551_v47, %v530_v31  ;;  %v541_v50 = vrot.slane %v531_v4, 7  ;;  %v556_v2 = vrot.slane %v531_v4, 1  ;;  %v1459_v53 = vmin.f32 %v651_v62, %v659_v46 }
 0x21c   :  { %692 = vrot.lane.b32.xlu1 %v1422_v16, %s981_s0  ;;  %v579_v56 = vmax.f32 %v575_v54, %v571_v10 }
 0x21d   :  { %v542_v49 = vsel %vm67_vm0, %v540_v3, %v541_v50  ;;  %v544_v6 = vsel %vm67_vm0, %v541_v50, %v543_v35  ;;  %v559_v12 = vsel %vm83_vm1, %v556_v2, %v558_v36  ;;  %672 = vrot.lane.b32.xlu0 %v1459_v53, %s980_s20  ;;  %v557_v42 = vsel %vm83_vm1, %v555_v61, %v556_v2 }
 0x21e   :  { %v553_v14 = vsel %vm40_vm4, -1e+30, %v544_v6  ;;  %v569_v62 = vsel %vm47_vm6, -1e+30, %v559_v12  ;;  %v573_v15 = vmax.f32 %v542_v49, %v531_v4  ;;  %v583_v18 = vsub.f32 %v1187_v22, %v579_v56 }
 0x21f   :  { %v576_v20 = vmax.f32 %v572_v60, %v557_v42  ;;  %v574_v51 = vmax.f32 %v553_v14, %v532_v25 }
 0x220   :  { %v577_v63 = vmax.f32 %v573_v15, %v569_v62  ;;  %690 = vrot.lane.b32.xlu1 %v1438_v34, %s981_s0  ;;  %v587_v21 = vmax.f32 %v583_v18, 0.0 }
 0x221   :  { %686 = vrot.lane.b32.xlu0 %v1441_v59, %s981_s0  ;;  %v580_v13 = vsub.f32 %v1189_v28, %v576_v20  ;;  %v578_v23 = vmax.f32 %v574_v51, %v561_v48 }
 0x222   :  { %v591_v27 = vmul.f32 %v587_v21, %v1363_v7  ;;  %v581_v29 = vsub.f32 %v1215_v55, %v577_v63 }
 0x223   :  { %v584_v30 = vmax.f32 %v580_v13, 0.0  ;;  %v582_v22 = vsub.f32 %v1207_v43, %v578_v23 }
 0x224   :  { %v595_v31 = vsub.f32 %v587_v21, %v591_v27  ;;  %v585_v25 = vmax.f32 %v581_v29, 0.0 }
 0x225   :  { %688 = vrot.lane.b32.xlu0 %v1459_v53, %s981_s0  ;;  %v588_v32 = vmul.f32 %v584_v30, %v1367_v58  ;;  %v586_v33 = vmax.f32 %v582_v22, 0.0 }
 0x226   :  { %v599_v35 = vmax.f32 %v595_v31, 0.0  ;;  %v589_v36 = vmul.f32 %v585_v25, %v1365_v57 }
 0x227   :  { %v592_v28 = vsub.f32 %v584_v30, %v588_v32  ;;  %v590_v37 = vmul.f32 %v586_v33, %v1369_v8 }
 0x228   :  { %v1488_v3 = vadd.f32 %v599_v35, %v1363_v7  ;;  %v593_v55 = vsub.f32 %v585_v25, %v589_v36 }
 0x229   :  { %v596_v61 = vmax.f32 %v592_v28, 0.0  ;;  %v594_v43 = vsub.f32 %v586_v33, %v590_v37 }
 0x22a   :  { %v597_v38 = vmax.f32 %v593_v55, 0.0 }
 0x22b   :  { %v1491_v40 = vadd.f32 %v596_v61, %v1367_v58  ;;  %v598_v41 = vmax.f32 %v594_v43, 0.0 }
 0x22c   :  { %v1494_v0 = vadd.f32 %v597_v38, %v1365_v57 }
 0x22d   :  { %v1497_v48 = vadd.f32 %v598_v41, %v1369_v8 }
 0x286   :  { %v677_v44 = vpop.permute.xlu1 %676 }
 0x287   :  { %v685_v7 = vsel %vm1057_vm5, -1e+30, %v677_v44 }
 0x288   :  { %v705_v47 = vmax.f32 %v685_v7, %v1422_v16 }
 0x28a   :  { %v675_v1 = vpop.permute.xlu1 %674 }
 0x28b   :  { %v671_v4 = vpop.permute.xlu0 %670  ;;  %v684_v58 = vsel %vm1057_vm5, -1e+30, %v675_v1 }
 0x28c   :  { %v682_v8 = vsel %vm1057_vm5, -1e+30, %v671_v4  ;;  %v704_v60 = vmax.f32 %v684_v58, %v1438_v34 }
 0x28d   :  { %v702_v2 = vmax.f32 %v682_v8, %v1441_v59 }
 0x28e   :  { %v693_v46 = vpop.permute.xlu1 %692 }
 0x28f   :  { %v673_v10 = vpop.permute.xlu0 %672  ;;  %v701_v57 = vsel %vm1076_vm7, -1e+30, %v693_v46 }
 0x290   :  { %v709_v54 = vmax.f32 %v705_v47, %v701_v57  ;;  %v683_v49 = vsel %vm1057_vm5, -1e+30, %v673_v10 }
 0x291   :  { %v703_v34 = vmax.f32 %v683_v49, %v1459_v53 }
 0x292   :  { %v691_v50 = vpop.permute.xlu1 %690  ;;  %v711_v42 = vrot.slane %v709_v54, 7  ;;  %v736_v14 = vrot.slane %v709_v54, 1 }
 0x293   :  { %v687_v56 = vpop.permute.xlu0 %686  ;;  %v700_v16 = vsel %vm1076_vm7, -1e+30, %v691_v50 }
 0x294   :  { %v698_v6 = vsel %vm1076_vm7, -1e+30, %v687_v56  ;;  %v708_v12 = vmax.f32 %v704_v60, %v700_v16 }
 0x295   :  { %v706_v62 = vmax.f32 %v702_v2, %v698_v6  ;;  %v925_v6 = vld [vmem:[#allocation2 + $0x10] sm:$0xff] }
 0x296   :  { %v719_v15 = vrot.slane %v708_v12, 7  ;;  %v734_v63 = vrot.slane %v708_v12, 1 }
 0x297   :  { %v716_v18 = vrot.slane %v706_v62, 7  ;;  %v731_v20 = vrot.slane %v706_v62, 1  ;;  %v689_v59 = vpop.permute.xlu0 %688 }
 0x298   :  { %v721_v51 = vsel %vm67_vm0, %v719_v15, %v711_v42  ;;  %v699_v26 = vsel %vm1076_vm7, -1e+30, %v689_v59  ;;  %v737_v41 = vsel %vm83_vm1, %v734_v63, %v736_v14 }
 0x299   :  { %v726_v21 = vsel %vm67_vm0, %v711_v42, %v716_v18  ;;  %v707_v13 = vmax.f32 %v703_v34, %v699_v26  ;;  %v743_v23 = vsel %vm83_vm1, %v736_v14, %v731_v20  ;;  %v751_v27 = vmax.f32 %v721_v51, %v709_v54  ;;  %v927_v14 = vld [vmem:[#allocation2] sm:$0xff] }
 0x29a   :  { %v727_v29 = vsel %vm34_vm2, -1e+30, %v726_v21  ;;  %v747_v53 = vsel %vm53_vm3, -1e+30, %v743_v23 }
 0x29b   :  { %v748_v30 = vmax.f32 %v727_v29, %v706_v62  ;;  %v717_v22 = vrot.slane %v707_v13, 7  ;;  %v732_v31 = vrot.slane %v707_v13, 1  ;;  %v755_v25 = vmax.f32 %v751_v27, %v747_v53 }
 0x29d   :  { %v718_v32 = vsel %vm67_vm0, %v716_v18, %v717_v22  ;;  %v720_v39 = vsel %vm67_vm0, %v717_v22, %v719_v15  ;;  %v735_v33 = vsel %vm83_vm1, %v732_v31, %v734_v63  ;;  %v759_v35 = vsub.f32 %v1297_v24, %v755_v25  ;;  %v928_v15 = vld [vmem:[#allocation2 + $0x8] sm:$0xff] }
 0x29e   :  { %v745_v36 = vsel %vm47_vm6, -1e+30, %v735_v33  ;;  %v749_v28 = vmax.f32 %v718_v32, %v707_v13  ;;  %v733_v37 = vsel %vm83_vm1, %v731_v20, %v732_v31  ;;  %v729_v9 = vsel %vm40_vm4, -1e+30, %v720_v39 }
 0x29f   :  { %v763_v55 = vmax.f32 %v759_v35, 0.0  ;;  %v752_v61 = vmax.f32 %v748_v30, %v733_v37  ;;  %v750_v43 = vmax.f32 %v729_v9, %v708_v12 }
 0x2a0   :  { %v753_v38 = vmax.f32 %v749_v28, %v745_v36 }
 0x2a1   :  { %v767_v44 = vmul.f32 %v763_v55, %v1488_v3  ;;  %v756_v1 = vsub.f32 %v1311_v45, %v752_v61  ;;  %v754_v24 = vmax.f32 %v750_v43, %v737_v41 }
 0x2a2   :  { %v757_v17 = vsub.f32 %v1331_v19, %v753_v38 }
 0x2a3   :  { %v771_v4 = vsub.f32 %v763_v55, %v767_v44  ;;  %v760_v7 = vmax.f32 %v756_v1, 0.0  ;;  %v758_v46 = vsub.f32 %v1313_v52, %v754_v24 }
 0x2a4   :  { %v761_v47 = vmax.f32 %v757_v17, 0.0 }
 0x2a5   :  { %v775_v11 = vmax.f32 %v771_v4, 0.0  ;;  %v764_v58 = vmul.f32 %v760_v7, %v1491_v40  ;;  %v762_v10 = vmax.f32 %v758_v46, 0.0 }
 0x2a6   :  { %v765_v57 = vmul.f32 %v761_v47, %v1494_v0 }
 0x2a7   :  { %v779_v8 = vadd.f32 %v775_v11, %v1488_v3  ;;  %v768_v54 = vsub.f32 %v760_v7, %v764_v58  ;;  %v766_v60 = vmul.f32 %v762_v10, %v1497_v48  ;;  %v926_v3 = vld [vmem:[#allocation2 + $0x18] sm:$0xff] }
 0x2a8   :  { %v769_v45 = vsub.f32 %v761_v47, %v765_v57 }
 0x2a9   :  { %790 = vadd.xlane.f32.xlu0 %v779_v8  ;;  %v772_v50 = vmax.f32 %v768_v54, 0.0  ;;  %v770_v19 = vsub.f32 %v762_v10, %v766_v60  ;;  %v783_v34 = vmul.f32 %v928_v15, %v779_v8 }
 0x2aa   :  { %v773_v2 = vmax.f32 %v769_v45, 0.0 }
 0x2ab   :  { %v776_v56 = vadd.f32 %v772_v50, %v1491_v40  ;;  %v774_v52 = vmax.f32 %v770_v19, 0.0 }
 0x2ac   :  { %v777_v16 = vadd.f32 %v773_v2, %v1494_v0 }
 0x2ad   :  { %784 = vadd.xlane.f32.xlu0 %v776_v56  ;;  %v778_v49 = vadd.f32 %v774_v52, %v1497_v48  ;;  %v780_v12 = vmul.f32 %v925_v6, %v776_v56 }
 0x2ae   :  { %786 = vadd.xlane.f32.xlu1 %v777_v16  ;;  %v781_v42 = vmul.f32 %v926_v3, %v777_v16 }
 0x2af   :  { %v782_v62 = vmul.f32 %v927_v14, %v778_v49 }
 0x2b1   :  { %788 = vadd.xlane.f32.xlu0 %v778_v49 }
 0x2b2   :  { %792 = vadd.xlane.f32.xlu1 %v780_v12 }
 0x2b5   :  { %794 = vadd.xlane.f32.xlu0 %v781_v42 }
 0x2b6   :  { %796 = vadd.xlane.f32.xlu1 %v782_v62 }
 0x2b9   :  { %798 = vadd.xlane.f32.xlu0 %v783_v34 }
 0x336   :  { %v791_v40 = vpop.xlane.xlu0 %790 }
 0x337   :  { %v833_v63 = vsel %vm113_vm8, %v791_v40, 0.0 }
 0x33a   :  { %v785_v0 = vpop.xlane.xlu0 %784 }
 0x33b   :  { %v787_v18 = vpop.xlane.xlu1 %786  ;;  %v808_v20 = vsel %vm113_vm8, %v785_v0, 0.0 }
 0x33c   :  { %v809_v48 = vsel %vm113_vm8, %v787_v18, 0.0 }
 0x33d   :  { %v810_v59 = vadd.f32 %v809_v48, %v808_v20 }
 0x33e   :  { %v789_v51 = vpop.xlane.xlu0 %788 }
 0x33f   :  { %v793_v26 = vpop.xlane.xlu1 %792  ;;  %815 = vadd.xlane.f32.xlu1 %v810_v59  ;;  %v831_v21 = vsel %vm113_vm8, %v789_v51, 0.0 }
 0x340   :  { %v834_v13 = vadd.f32 %v833_v63, %v831_v21  ;;  %v848_v27 = vsel %vm113_vm8, %v793_v26, 0.0 }
 0x342   :  { %835 = vadd.xlane.f32.xlu0 %v834_v13  ;;  %v795_v23 = vpop.xlane.xlu0 %794 }
 0x343   :  { %v849_v29 = vsel %vm113_vm8, %v795_v23, 0.0  ;;  %v797_v53 = vpop.xlane.xlu1 %796 }
 0x344   :  { %v850_v30 = vadd.f32 %v849_v29, %v848_v27  ;;  %v871_v31 = vsel %vm113_vm8, %v797_v53, 0.0 }
 0x346   :  { %855 = vadd.xlane.f32.xlu1 %v850_v30  ;;  %v799_v22 = vpop.xlane.xlu0 %798 }
 0x347   :  { %v873_v25 = vsel %vm113_vm8, %v799_v22, 0.0 }
 0x348   :  { %v874_v32 = vadd.f32 %v873_v25, %v871_v31 }
 0x34a   :  { %875 = vadd.xlane.f32.xlu0 %v874_v32 }
 0x3cc   :  { %v816_v39 = vpop.xlane.xlu1 %815 }
 0x3cd   :  { %v817_v33 = vrot.slane %v816_v39, 4 }
 0x3cf   :  { %v818_v35 = vadd.f32 %v817_v33, %v816_v39  ;;  %v836_v36 = vpop.xlane.xlu0 %835 }
 0x3d0   :  { %v837_v28 = vrot.slane %v836_v36, 4 }
 0x3d1   :  { %v819_v37 = vrot.slane %v818_v35, 2 }
 0x3d2   :  { %v838_v9 = vadd.f32 %v837_v28, %v836_v36 }
 0x3d3   :  { %v856_v55 = vpop.xlane.xlu1 %855  ;;  %v820_v61 = vadd.f32 %v819_v37, %v818_v35 }
 0x3d4   :  { %v839_v43 = vrot.slane %v838_v9, 2  ;;  %v857_v38 = vrot.slane %v856_v55, 4 }
 0x3d5   :  { %v821_v41 = vrot.slane %v820_v61, 1 }
 0x3d6   :  { %v858_v44 = vadd.f32 %v857_v38, %v856_v55  ;;  %v840_v1 = vadd.f32 %v839_v43, %v838_v9 }
 0x3d7   :  { %v876_v24 = vpop.xlane.xlu0 %875  ;;  %v822_v17 = vadd.f32 %v821_v41, %v820_v61 }
 0x3d8   :  { %v859_v4 = vrot.slane %v858_v44, 2  ;;  %v877_v7 = vrot.slane %v876_v24, 4  ;;  %v841_v46 = vrot.slane %v840_v1, 1 }
 0x3d9   :  { %911 = vpush %v822_v17 }
 0x3da   :  { %v860_v47 = vadd.f32 %v859_v4, %v858_v44  ;;  %v878_v11 = vadd.f32 %v877_v7, %v876_v24  ;;  %v842_v58 = vadd.f32 %v841_v46, %v840_v1 }
 0x3dc   :  { %v879_v10 = vrot.slane %v878_v11, 2  ;;  %913 = vpush %v842_v58  ;;  %v861_v57 = vrot.slane %v860_v47, 1 }
 0x3de   :  { %v880_v8 = vadd.f32 %v879_v10, %v878_v11  ;;  %v862_v54 = vadd.f32 %v861_v57, %v860_v47 }
 0x3e0   :  { %915 = vpush %v862_v54  ;;  %v881_v60 = vrot.slane %v880_v8, 1 }
 0x3e2   :  { %v882_v45 = vadd.f32 %v881_v60, %v880_v8 }
 0x3e4   :  { %917 = vpush %v882_v45 }
 0x40a   :  { %s912_s21 = spop %911 }
 0x40b   :  { %v887_v50 = vstv %s912_s21 }
 0x40c   :  { %v888_v19 = vsel %vm886_vm9, %v887_v50, 0.0 }
 0x40d   :  { %s914_s22 = spop %913 }
 0x40e   :  { %v891_v52 = vstv %s914_s22 }
 0x411   :  { %s916_s23 = spop %915 }
 0x412   :  { %v889_v2 = vstv %s916_s23 }
 0x413   :  { %v890_v56 = vsel %vm885_vm10, %v889_v2, %v888_v19 }
 0x414   :  { %v892_v16 = vsel %vm884_vm11, %v891_v52, %v890_v56 }
 0x415   :  { %s918_s26 = spop %917 }
 0x416   :  { %v893_v49 = vstv %s918_s26 }
 0x417   :  { %v894_v6 = vsel %vm34_vm2, %v893_v49, %v892_v16 }
 0x418   :  { %895 = vst [vmem:[#allocation5] sm:$0xff] %v894_v6 }
 0x419   :  { %962 = shalt.err (!%p959_p12)
}
 0x41a   :  { %s963_s30 = scalar_lea.hbm %s1573_s1, 128 }
 0x41b   :  { %p964_p13 = scmp.ne.s32.totalorder %s1573_s1, %s963_s30  ;;  %p967_p0 = scmp.lt.u32.totalorder %s963_s30, %s1573_s1 }
 0x41d   :  { %p969_p1 = pnand %p967_p0, %p964_p13 }
 0x41f   :  { %972 = shalt.err (!%p969_p1)
}
 0x420   :  { %905 = dma.vmem_to_hbm [thread:$0]  %s903_s25, 128, %s1573_s1, [#allocation4]  }
 0x421   :  { %975 = dma.done.wait [#allocation4], 128  }
 0x422   :  { %976 = vsyncadd [#allocation4], 4294967168 }
 0x423   :  { %909 = vsyncpa [#allocation3], 1 }
 0x424   :  { %910 = vsyncpa [#allocation4], 1 }

</bundles_post_ra>
